<compile_context>
chip_gen: v7x
topology: tpu7x:2x2x1
jax: 0.10.0
libtpu: 0.0.40
codegen_flags: <defaults>
</compile_context>

<pallas_src>
import functools
import numpy as np
import jax
import jax.numpy as jnp
from jax.experimental import pallas as pl
from jax.experimental.pallas import tpu as pltpu  # noqa: F401  (kept for optional CompilerParams tuning)

# ----------------------------- configuration ------------------------------
B, L, D, H, FFN = 2, 8, 32, 4, 64          # batch, seq len, model dim, heads, ffn dim
NUM_LAYERS = 2
VOCAB = 16
MAX_SEQ_LEN = 8
DPH = D // H                                # dim per head
EPS = 1e-5                                  # nn.LayerNorm default eps
PAD = 0                                     # Constants.PAD
NEG_BIG = -1e30                             # additive mask == masked_fill(-inf) after softmax


# ------------------------------ Pallas kernel -----------------------------
def _layer_norm(x, w, b):
    mu = jnp.mean(x, axis=-1, keepdims=True)
    var = jnp.mean((x - mu) ** 2, axis=-1, keepdims=True)
    return (x - mu) * jax.lax.rsqrt(var + EPS) * w + b


def encoder_kernel(x_ref, bias_ref, npm_ref,
                   wqkv_ref, bqkv_ref, wo_ref, bo_ref, ln1w_ref, ln1b_ref,
                   w1_ref, b1_ref, w2_ref, b2_ref, ln2w_ref, ln2b_ref,
                   out_ref, attn_ref, *,
                   num_layers, batch, seq_len, model_dim, num_heads, dim_per_head):
    x = x_ref[...]                       # (B*L, D)   residual stream, all tokens
    npm = npm_ref[...]                   # (B*L, 1)   non-pad mask
    bias = bias_ref[...]                 # (H*B, L, L) additive key-padding mask
    hb = num_heads * batch

    for layer in range(num_layers):      # static: fully unrolled, weights stay VMEM-resident
        # fused Q|K|V projection over all B*L tokens (scale pre-folded into Q columns)
        qkv = jnp.dot(x, wqkv_ref[layer],
                      preferred_element_type=jnp.float32) + bqkv_ref[layer]   # (B*L, 3D)

        def head_major(base):
            # (B*L, H*DPH) column blocks -> (H*B, L, DPH) in PyTorch head-major order.
            cols = jnp.concatenate(
                [qkv[:, base + h * dim_per_head: base + (h + 1) * dim_per_head]
                 for h in range(num_heads)], axis=0)             # (H*B*L, DPH)
            return cols.reshape(hb, seq_len, dim_per_head)

        qh = head_major(0)
        kh = head_major(model_dim)
        vh = head_major(2 * model_dim)

        # scores already scaled (1/sqrt(d_head) folded into wq); batched over H*B
        s = jnp.einsum('hqd,hkd->hqk', qh, kh,
                       preferred_element_type=jnp.float32) + bias   # (H*B, L, L)
        m = jnp.max(s, axis=-1, keepdims=True)
        p = jnp.exp(s - m)
        # exact reciprocal keeps the 1e-4 parity with the reference
        p = p * pl.reciprocal(jnp.sum(p, axis=-1, keepdims=True), approx=False)
        attn_ref[layer] = p                  # single packed store / layer, head-major layout

        ctx = jnp.einsum('hqk,hkd->hqd', p, vh,
                         preferred_element_type=jnp.float32)         # (H*B, L, DPH)
        ctx = ctx.reshape(num_heads, batch * seq_len, dim_per_head)  # (H, B*L, DPH)

        # output projection: accumulate per-head row-blocks of W_o (no concat back to D)
        wo_l = wo_ref[layer]                                          # (H, DPH, D)
        attn_out = bo_ref[layer]                                      # (1, D)
        for h in range(num_heads):
            attn_out = attn_out + jnp.dot(ctx[h], wo_l[h],
                                          preferred_element_type=jnp.float32)
        y = _layer_norm(x + attn_out, ln1w_ref[layer], ln1b_ref[layer]) * npm

        # position-wise FFN (Conv1d kernel-size-1 == per-token linear) + residual + LayerNorm
        h1 = jnp.maximum(
            jnp.dot(y, w1_ref[layer], preferred_element_type=jnp.float32) + b1_ref[layer], 0.0)
        ff = jnp.dot(h1, w2_ref[layer], preferred_element_type=jnp.float32) + b2_ref[layer]
        x = _layer_norm(y + ff, ln2w_ref[layer], ln2b_ref[layer]) * npm

    out_ref[...] = x                      # (B*L, D)


# ------------------------------ wrapper glue -------------------------------
def stack_layer_params(layer_params):
    """Pre-transpose / fuse / stack per-layer weights for the kernel."""
    inv_temp = jnp.float32(1.0 / np.sqrt(DPH))

    def st(fn):
        return jnp.stack([fn(p) for p in layer_params], axis=0)

    return {
        "wqkv": st(lambda p: jnp.concatenate([p["wq"] * inv_temp, p["wk"], p["wv"]], axis=1)),
        "bqkv": st(lambda p: jnp.concatenate([p["bq"] * inv_temp, p["bk"], p["bv"]], axis=1)),
        # W_o pre-split into per-head row blocks (H, DPH, D) so the kernel never slices it
        "wo": st(lambda p: p["wo"]).reshape(NUM_LAYERS, H, DPH, D),
        "bo": st(lambda p: p["bo"]),
        "ln1w": st(lambda p: p["ln1w"]), "ln1b": st(lambda p: p["ln1b"]),
        "w1": st(lambda p: p["w1"]), "b1": st(lambda p: p["b1"]),
        "w2": st(lambda p: p["w2"]), "b2": st(lambda p: p["b2"]),
        "ln2w": st(lambda p: p["ln2w"]), "ln2b": st(lambda p: p["ln2b"]),
    }


@jax.jit
def encoder_forward(inputs, inputs_len, seq_emb, pos_emb, stacked):
    # embedding gathers + mask construction stay in (now-jitted) XLA around the kernel
    non_pad_mask = (inputs != PAD).astype(jnp.float32).reshape(B * L, 1)        # (B*L, 1)
    key_bias = jnp.where(inputs == PAD, NEG_BIG, 0.0).astype(jnp.float32)       # (B, L)
    mask_bias = jnp.broadcast_to(key_bias[None, :, None, :],
                                 (H, B, L, L)).reshape(H * B, L, L)             # (H*B, L, L)
    x = (seq_emb[inputs] + pos_emb[inputs_len]).reshape(B * L, D)               # (B*L, D)

    kernel = functools.partial(
        encoder_kernel, num_layers=NUM_LAYERS, batch=B, seq_len=L,
        model_dim=D, num_heads=H, dim_per_head=DPH)

    out_flat, attn_all = pl.pallas_call(
        kernel,
        out_shape=[jax.ShapeDtypeStruct((B * L, D), jnp.float32),
                   jax.ShapeDtypeStruct((NUM_LAYERS, H * B, L, L), jnp.float32)],
    )(x, mask_bias, non_pad_mask,
      stacked["wqkv"], stacked["bqkv"], stacked["wo"], stacked["bo"],
      stacked["ln1w"], stacked["ln1b"], stacked["w1"], stacked["b1"],
      stacked["w2"], stacked["b2"], stacked["ln2w"], stacked["ln2b"])

    return out_flat.reshape(B, L, D), attn_all


# ------------------------------ parameter init -----------------------------
def get_sinusoid_encoding_table(n_position, d_hid, padding_idx=None):
    pos = np.arange(n_position)[:, None].astype(np.float64)
    hid = np.arange(d_hid)[None, :]
    angle = pos / np.power(10000, 2 * (hid // 2) / d_hid)
    table = np.zeros((n_position, d_hid), dtype=np.float64)
    table[:, 0::2] = np.sin(angle[:, 0::2])
    table[:, 1::2] = np.cos(angle[:, 1::2])
    if padding_idx is not None:
        table[padding_idx] = 0.0
    return jnp.asarray(table, dtype=jnp.float32)


def init_layer_params(key):
    ks = jax.random.split(key, 10)
    std_qkv = np.sqrt(2.0 / (D + DPH))
    xavier = np.sqrt(2.0 / (D + D))
    f32 = jnp.float32
    return {
        "wq": jax.random.normal(ks[0], (D, D), f32) * std_qkv,
        "bq": jax.random.normal(ks[1], (1, D), f32) * 0.01,
        "wk": jax.random.normal(ks[2], (D, D), f32) * std_qkv,
        "bk": jax.random.normal(ks[3], (1, D), f32) * 0.01,
        "wv": jax.random.normal(ks[4], (D, D), f32) * std_qkv,
        "bv": jax.random.normal(ks[5], (1, D), f32) * 0.01,
        "wo": jax.random.normal(ks[6], (D, D), f32) * xavier,
        "bo": jnp.zeros((1, D), f32),
        "ln1w": jnp.ones((1, D), f32),
        "ln1b": jnp.zeros((1, D), f32),
        "w1": jax.random.normal(ks[7], (D, FFN), f32) * 0.1,
        "b1": jax.random.normal(ks[8], (1, FFN), f32) * 0.01,
        "w2": jax.random.normal(ks[9], (FFN, D), f32) * 0.1,
        "b2": jnp.zeros((1, D), f32),
        "ln2w": jnp.ones((1, D), f32),
        "ln2b": jnp.zeros((1, D), f32),
    }


# ---------------------------- pure-JAX reference ---------------------------
def _ref_layer(x, attn_mask, npm, p):
    q = x @ p["wq"] + p["bq"]
    k = x @ p["wk"] + p["bk"]
    v = x @ p["wv"] + p["bv"]
    qh = q.reshape(B, L, H, DPH).transpose(2, 0, 1, 3)
    kh = k.reshape(B, L, H, DPH).transpose(2, 0, 1, 3)
    vh = v.reshape(B, L, H, DPH).transpose(2, 0, 1, 3)
    s = jnp.einsum("hbqd,hbkd->hbqk", qh, kh) / np.sqrt(DPH)
    s = jnp.where(attn_mask[None] > 0.5, -jnp.inf, s)
    pa = jax.nn.softmax(s, axis=-1)
    ctx = jnp.einsum("hbqk,hbkd->hbqd", pa, vh).transpose(1, 2, 0, 3).reshape(B, L, D)
    o = ctx @ p["wo"] + p["bo"]
    y = _layer_norm(x + o, p["ln1w"], p["ln1b"]) * npm
    ff = jnp.maximum(y @ p["w1"] + p["b1"], 0.0) @ p["w2"] + p["b2"]
    z = _layer_norm(y + ff, p["ln2w"], p["ln2b"]) * npm
    return z, pa.reshape(H * B, L, L)


def _ref_encoder(inputs, inputs_len, seq_emb, pos_emb, layer_params):
    npm = (inputs != PAD).astype(jnp.float32)[..., None]
    attn_mask = jnp.tile((inputs == PAD).astype(jnp.float32)[:, None, :], (1, L, 1))
    out = seq_emb[inputs] + pos_emb[inputs_len]
    attns = []
    for p in layer_params:
        out, a = _ref_layer(out, attn_mask, npm, p)
        attns.append(a)
    return out, attns


# ----------------------------------- main ----------------------------------
if __name__ == "__main__":
    key = jax.random.PRNGKey(0)
    k_emb, k_par, k_inp = jax.random.split(key, 3)

    # deterministic parameters
    seq_emb = jax.random.normal(k_emb, (VOCAB, D), jnp.float32)
    seq_emb = seq_emb.at[PAD].set(0.0)                        # padding_idx=0
    pos_emb = get_sinusoid_encoding_table(MAX_SEQ_LEN + 1, D, padding_idx=0)
    layer_params = [init_layer_params(jax.random.fold_in(k_par, l))
                    for l in range(NUM_LAYERS)]
    stacked = stack_layer_params(layer_params)

    # deterministic inputs: token ids (B, L), with PAD at the tail of sequence 0
    inputs = jax.random.randint(k_inp, (B, L), 1, VOCAB, dtype=jnp.int32)
    inputs = inputs.at[0, L - 2:].set(PAD)
    # position indices fed to pos_embedding (same shape as inputs, 0 at PAD)
    positions = jnp.where(inputs != PAD, jnp.arange(1, L + 1, dtype=jnp.int32)[None, :], 0)

    out, attn_all = encoder_forward(inputs, positions, seq_emb, pos_emb, stacked)
    out = jax.block_until_ready(out)
    attn_all = jax.block_until_ready(attn_all)
    attns = [attn_all[l] for l in range(NUM_LAYERS)]          # each (H*B, L, L), head-major

    # sanity check against a pure-JAX reference (PyTorch semantics)
    ref_out, ref_attns = _ref_encoder(inputs, positions, seq_emb, pos_emb, layer_params)
    np.testing.assert_allclose(np.asarray(out), np.asarray(ref_out), atol=1e-4, rtol=1e-4)
    for a, ra in zip(attns, ref_attns):
        np.testing.assert_allclose(np.asarray(a), np.asarray(ra), atol=1e-4, rtol=1e-4)

    print("KERNEL_OK")
</pallas_src>

<mosaic_0001>
module attributes {stable_mosaic.version = 11 : i64} {
  func.func @encoder_kernel(%arg0: memref<16x32xf32, #tpu.memory_space<vmem>>, %arg1: memref<8x8x8xf32, #tpu.memory_space<vmem>>, %arg2: memref<16x1xf32, #tpu.memory_space<vmem>>, %arg3: memref<2x32x96xf32, #tpu.memory_space<vmem>>, %arg4: memref<2x1x96xf32, #tpu.memory_space<vmem>>, %arg5: memref<2x4x8x32xf32, #tpu.memory_space<vmem>>, %arg6: memref<2x1x32xf32, #tpu.memory_space<vmem>>, %arg7: memref<2x1x32xf32, #tpu.memory_space<vmem>>, %arg8: memref<2x1x32xf32, #tpu.memory_space<vmem>>, %arg9: memref<2x32x64xf32, #tpu.memory_space<vmem>>, %arg10: memref<2x1x64xf32, #tpu.memory_space<vmem>>, %arg11: memref<2x64x32xf32, #tpu.memory_space<vmem>>, %arg12: memref<2x1x32xf32, #tpu.memory_space<vmem>>, %arg13: memref<2x1x32xf32, #tpu.memory_space<vmem>>, %arg14: memref<2x1x32xf32, #tpu.memory_space<vmem>>, %arg15: memref<16x32xf32, #tpu.memory_space<vmem>>, %arg16: memref<2x8x8x8xf32, #tpu.memory_space<vmem>>) attributes {dimension_semantics = [], scalar_prefetch = 0 : i64, scratch_operands = 0 : i64, tpu.core_type = #tpu.core_type<tc>} {
    %c0 = arith.constant 0 : index
    %c0_0 = arith.constant 0 : index
    %0 = vector.load %arg0[%c0, %c0_0] : memref<16x32xf32, #tpu.memory_space<vmem>>, vector<16x32xf32>
    %c0_1 = arith.constant 0 : index
    %c0_2 = arith.constant 0 : index
    %1 = vector.load %arg2[%c0_1, %c0_2] : memref<16x1xf32, #tpu.memory_space<vmem>>, vector<16x1xf32>
    %c0_3 = arith.constant 0 : index
    %c0_4 = arith.constant 0 : index
    %c0_5 = arith.constant 0 : index
    %2 = vector.load %arg1[%c0_3, %c0_4, %c0_5] : memref<8x8x8xf32, #tpu.memory_space<vmem>>, vector<8x8x8xf32>
    %c0_6 = arith.constant 0 : index
    %c0_7 = arith.constant 0 : index
    %c0_8 = arith.constant 0 : index
    %3 = vector.load %arg3[%c0_6, %c0_7, %c0_8] : memref<2x32x96xf32, #tpu.memory_space<vmem>>, vector<1x32x96xf32>
    %4 = vector.shape_cast %3 : vector<1x32x96xf32> to vector<32x96xf32>
    %cst = arith.constant dense<0.000000e+00> : vector<16x96xf32>
    %5 = tpu.matmul %0, %4, %cst {dimension_numbers = #tpu.dot_dimension_numbers<[1], [0], [0], [1], [0, 0, 1, 1], [], []>} : vector<16x32xf32>, vector<32x96xf32>, vector<16x96xf32> -> vector<16x96xf32>
    %c0_9 = arith.constant 0 : index
    %c0_10 = arith.constant 0 : index
    %c0_11 = arith.constant 0 : index
    %6 = vector.load %arg4[%c0_9, %c0_10, %c0_11] : memref<2x1x96xf32, #tpu.memory_space<vmem>>, vector<1x1x96xf32>
    %7 = vector.shape_cast %6 : vector<1x1x96xf32> to vector<1x96xf32>
    %8 = vector.broadcast %7 : vector<1x96xf32> to vector<16x96xf32>
    %9 = arith.addf %5, %8 : vector<16x96xf32>
    %10 = vector.extract_strided_slice %9 {offsets = [0, 0], sizes = [16, 8], strides = [1, 1]} : vector<16x96xf32> to vector<16x8xf32>
    %11 = vector.extract_strided_slice %9 {offsets = [0, 8], sizes = [16, 8], strides = [1, 1]} : vector<16x96xf32> to vector<16x8xf32>
    %12 = vector.extract_strided_slice %9 {offsets = [0, 16], sizes = [16, 8], strides = [1, 1]} : vector<16x96xf32> to vector<16x8xf32>
    %13 = vector.extract_strided_slice %9 {offsets = [0, 24], sizes = [16, 8], strides = [1, 1]} : vector<16x96xf32> to vector<16x8xf32>
    %14 = tpu.concatenate %10, %11, %12, %13 in 0 : vector<16x8xf32>, vector<16x8xf32>, vector<16x8xf32>, vector<16x8xf32> -> vector<64x8xf32>
    %15 = vector.shape_cast %14 : vector<64x8xf32> to vector<8x8x8xf32>
    %16 = vector.extract_strided_slice %9 {offsets = [0, 32], sizes = [16, 8], strides = [1, 1]} : vector<16x96xf32> to vector<16x8xf32>
    %17 = vector.extract_strided_slice %9 {offsets = [0, 40], sizes = [16, 8], strides = [1, 1]} : vector<16x96xf32> to vector<16x8xf32>
    %18 = vector.extract_strided_slice %9 {offsets = [0, 48], sizes = [16, 8], strides = [1, 1]} : vector<16x96xf32> to vector<16x8xf32>
    %19 = vector.extract_strided_slice %9 {offsets = [0, 56], sizes = [16, 8], strides = [1, 1]} : vector<16x96xf32> to vector<16x8xf32>
    %20 = tpu.concatenate %16, %17, %18, %19 in 0 : vector<16x8xf32>, vector<16x8xf32>, vector<16x8xf32>, vector<16x8xf32> -> vector<64x8xf32>
    %21 = vector.shape_cast %20 : vector<64x8xf32> to vector<8x8x8xf32>
    %22 = vector.extract_strided_slice %9 {offsets = [0, 64], sizes = [16, 8], strides = [1, 1]} : vector<16x96xf32> to vector<16x8xf32>
    %23 = vector.extract_strided_slice %9 {offsets = [0, 72], sizes = [16, 8], strides = [1, 1]} : vector<16x96xf32> to vector<16x8xf32>
    %24 = vector.extract_strided_slice %9 {offsets = [0, 80], sizes = [16, 8], strides = [1, 1]} : vector<16x96xf32> to vector<16x8xf32>
    %25 = vector.extract_strided_slice %9 {offsets = [0, 88], sizes = [16, 8], strides = [1, 1]} : vector<16x96xf32> to vector<16x8xf32>
    %26 = tpu.concatenate %22, %23, %24, %25 in 0 : vector<16x8xf32>, vector<16x8xf32>, vector<16x8xf32>, vector<16x8xf32> -> vector<64x8xf32>
    %27 = vector.shape_cast %26 : vector<64x8xf32> to vector<8x8x8xf32>
    "tpu.trace_start"() <{level = 10 : i32, message = "hqd,hkd->hqk"}> : () -> ()
    %cst_12 = arith.constant dense<0.000000e+00> : vector<8x8x8xf32>
    %28 = tpu.matmul %15, %21, %cst_12 {dimension_numbers = #tpu.dot_dimension_numbers<[2], [2], [1], [1], [0, 0, 0, 1, 1, 1], [0], [0]>} : vector<8x8x8xf32>, vector<8x8x8xf32>, vector<8x8x8xf32> -> vector<8x8x8xf32>
    "tpu.trace_stop"() : () -> ()
    %29 = arith.addf %28, %2 : vector<8x8x8xf32>
    %cst_13 = arith.constant dense<0xFF800000> : vector<8x8xf32>
    %30 = vector.multi_reduction <maximumf>, %29, %cst_13 [2] : vector<8x8x8xf32> to vector<8x8xf32>
    %31 = vector.shape_cast %30 : vector<8x8xf32> to vector<8x8x1xf32>
    %32 = vector.broadcast %31 : vector<8x8x1xf32> to vector<8x8x8xf32>
    %33 = arith.subf %29, %32 : vector<8x8x8xf32>
    %34 = math.exp %33 : vector<8x8x8xf32>
    %cst_14 = arith.constant dense<0.000000e+00> : vector<8x8xf32>
    %35 = vector.multi_reduction <add>, %34, %cst_14 [2] : vector<8x8x8xf32> to vector<8x8xf32>
    %36 = vector.shape_cast %35 : vector<8x8xf32> to vector<8x8x1xf32>
    %37 = tpu.reciprocal %36 : vector<8x8x1xf32> -> vector<8x8x1xf32>
    %38 = vector.broadcast %37 : vector<8x8x1xf32> to vector<8x8x8xf32>
    %39 = arith.mulf %34, %38 : vector<8x8x8xf32>
    %c0_15 = arith.constant 0 : index
    %c0_16 = arith.constant 0 : index
    %c0_17 = arith.constant 0 : index
    %c0_18 = arith.constant 0 : index
    %40 = vector.load %arg16[%c0_15, %c0_16, %c0_17, %c0_18] : memref<2x8x8x8xf32, #tpu.memory_space<vmem>>, vector<1x8x8x8xf32>
    %41 = vector.shape_cast %40 : vector<1x8x8x8xf32> to vector<8x8x8xf32>
    %42 = vector.shape_cast %39 : vector<8x8x8xf32> to vector<1x8x8x8xf32>
    tpu.vector_store %arg16[%c0_15, %c0_16, %c0_17, %c0_18], %42 {strides = array<i32>} : memref<2x8x8x8xf32, #tpu.memory_space<vmem>>, vector<1x8x8x8xf32>,
    "tpu.trace_start"() <{level = 10 : i32, message = "hqk,hkd->hqd"}> : () -> ()
    %cst_19 = arith.constant dense<0.000000e+00> : vector<8x8x8xf32>
    %43 = tpu.matmul %39, %27, %cst_19 {dimension_numbers = #tpu.dot_dimension_numbers<[2], [1], [1], [2], [0, 0, 0, 1, 1, 2], [0], [0]>} : vector<8x8x8xf32>, vector<8x8x8xf32>, vector<8x8x8xf32> -> vector<8x8x8xf32>
    "tpu.trace_stop"() : () -> ()
    %44 = vector.shape_cast %43 : vector<8x8x8xf32> to vector<4x16x8xf32>
    %c0_20 = arith.constant 0 : index
    %c0_21 = arith.constant 0 : index
    %c0_22 = arith.constant 0 : index
    %c0_23 = arith.constant 0 : index
    %45 = vector.load %arg5[%c0_20, %c0_21, %c0_22, %c0_23] : memref<2x4x8x32xf32, #tpu.memory_space<vmem>>, vector<1x4x8x32xf32>
    %46 = vector.shape_cast %45 : vector<1x4x8x32xf32> to vector<4x8x32xf32>
    %c0_24 = arith.constant 0 : index
    %c0_25 = arith.constant 0 : index
    %c0_26 = arith.constant 0 : index
    %47 = vector.load %arg6[%c0_24, %c0_25, %c0_26] : memref<2x1x32xf32, #tpu.memory_space<vmem>>, vector<1x1x32xf32>
    %48 = vector.shape_cast %47 : vector<1x1x32xf32> to vector<1x32xf32>
    %49 = vector.extract_strided_slice %44 {offsets = [0, 0, 0], sizes = [1, 16, 8], strides = [1, 1, 1]} : vector<4x16x8xf32> to vector<1x16x8xf32>
    %50 = vector.shape_cast %49 : vector<1x16x8xf32> to vector<16x8xf32>
    %51 = vector.extract_strided_slice %46 {offsets = [0, 0, 0], sizes = [1, 8, 32], strides = [1, 1, 1]} : vector<4x8x32xf32> to vector<1x8x32xf32>
    %52 = vector.shape_cast %51 : vector<1x8x32xf32> to vector<8x32xf32>
    %cst_27 = arith.constant dense<0.000000e+00> : vector<16x32xf32>
    %53 = tpu.matmul %50, %52, %cst_27 {dimension_numbers = #tpu.dot_dimension_numbers<[1], [0], [0], [1], [0, 0, 1, 1], [], []>} : vector<16x8xf32>, vector<8x32xf32>, vector<16x32xf32> -> vector<16x32xf32>
    %54 = vector.broadcast %48 : vector<1x32xf32> to vector<16x32xf32>
    %55 = arith.addf %54, %53 : vector<16x32xf32>
    %56 = vector.extract_strided_slice %44 {offsets = [1, 0, 0], sizes = [1, 16, 8], strides = [1, 1, 1]} : vector<4x16x8xf32> to vector<1x16x8xf32>
    %57 = vector.shape_cast %56 : vector<1x16x8xf32> to vector<16x8xf32>
    %58 = vector.extract_strided_slice %46 {offsets = [1, 0, 0], sizes = [1, 8, 32], strides = [1, 1, 1]} : vector<4x8x32xf32> to vector<1x8x32xf32>
    %59 = vector.shape_cast %58 : vector<1x8x32xf32> to vector<8x32xf32>
    %cst_28 = arith.constant dense<0.000000e+00> : vector<16x32xf32>
    %60 = tpu.matmul %57, %59, %cst_28 {dimension_numbers = #tpu.dot_dimension_numbers<[1], [0], [0], [1], [0, 0, 1, 1], [], []>} : vector<16x8xf32>, vector<8x32xf32>, vector<16x32xf32> -> vector<16x32xf32>
    %61 = arith.addf %55, %60 : vector<16x32xf32>
    %62 = vector.extract_strided_slice %44 {offsets = [2, 0, 0], sizes = [1, 16, 8], strides = [1, 1, 1]} : vector<4x16x8xf32> to vector<1x16x8xf32>
    %63 = vector.shape_cast %62 : vector<1x16x8xf32> to vector<16x8xf32>
    %64 = vector.extract_strided_slice %46 {offsets = [2, 0, 0], sizes = [1, 8, 32], strides = [1, 1, 1]} : vector<4x8x32xf32> to vector<1x8x32xf32>
    %65 = vector.shape_cast %64 : vector<1x8x32xf32> to vector<8x32xf32>
    %cst_29 = arith.constant dense<0.000000e+00> : vector<16x32xf32>
    %66 = tpu.matmul %63, %65, %cst_29 {dimension_numbers = #tpu.dot_dimension_numbers<[1], [0], [0], [1], [0, 0, 1, 1], [], []>} : vector<16x8xf32>, vector<8x32xf32>, vector<16x32xf32> -> vector<16x32xf32>
    %67 = arith.addf %61, %66 : vector<16x32xf32>
    %68 = vector.extract_strided_slice %44 {offsets = [3, 0, 0], sizes = [1, 16, 8], strides = [1, 1, 1]} : vector<4x16x8xf32> to vector<1x16x8xf32>
    %69 = vector.shape_cast %68 : vector<1x16x8xf32> to vector<16x8xf32>
    %70 = vector.extract_strided_slice %46 {offsets = [3, 0, 0], sizes = [1, 8, 32], strides = [1, 1, 1]} : vector<4x8x32xf32> to vector<1x8x32xf32>
    %71 = vector.shape_cast %70 : vector<1x8x32xf32> to vector<8x32xf32>
    %cst_30 = arith.constant dense<0.000000e+00> : vector<16x32xf32>
    %72 = tpu.matmul %69, %71, %cst_30 {dimension_numbers = #tpu.dot_dimension_numbers<[1], [0], [0], [1], [0, 0, 1, 1], [], []>} : vector<16x8xf32>, vector<8x32xf32>, vector<16x32xf32> -> vector<16x32xf32>
    %73 = arith.addf %67, %72 : vector<16x32xf32>
    %74 = arith.addf %0, %73 : vector<16x32xf32>
    %c0_31 = arith.constant 0 : index
    %c0_32 = arith.constant 0 : index
    %c0_33 = arith.constant 0 : index
    %75 = vector.load %arg7[%c0_31, %c0_32, %c0_33] : memref<2x1x32xf32, #tpu.memory_space<vmem>>, vector<1x1x32xf32>
    %76 = vector.shape_cast %75 : vector<1x1x32xf32> to vector<1x32xf32>
    %c0_34 = arith.constant 0 : index
    %c0_35 = arith.constant 0 : index
    %c0_36 = arith.constant 0 : index
    %77 = vector.load %arg8[%c0_34, %c0_35, %c0_36] : memref<2x1x32xf32, #tpu.memory_space<vmem>>, vector<1x1x32xf32>
    %78 = vector.shape_cast %77 : vector<1x1x32xf32> to vector<1x32xf32>
    %cst_37 = arith.constant dense<0.000000e+00> : vector<16xf32>
    %79 = vector.multi_reduction <add>, %74, %cst_37 [1] : vector<16x32xf32> to vector<16xf32>
    %80 = vector.shape_cast %79 : vector<16xf32> to vector<16x1xf32>
    %cst_38 = arith.constant 3.200000e+01 : f32
    %81 = vector.broadcast %cst_38 : f32 to vector<16x1xf32>
    %82 = arith.divf %80, %81 : vector<16x1xf32>
    %83 = vector.broadcast %82 : vector<16x1xf32> to vector<16x32xf32>
    %84 = arith.subf %74, %83 : vector<16x32xf32>
    %85 = arith.mulf %84, %84 : vector<16x32xf32>
    %cst_39 = arith.constant dense<0.000000e+00> : vector<16xf32>
    %86 = vector.multi_reduction <add>, %85, %cst_39 [1] : vector<16x32xf32> to vector<16xf32>
    %87 = vector.shape_cast %86 : vector<16xf32> to vector<16x1xf32>
    %cst_40 = arith.constant 3.200000e+01 : f32
    %88 = vector.broadcast %cst_40 : f32 to vector<16x1xf32>
    %89 = arith.divf %87, %88 : vector<16x1xf32>
    %90 = vector.broadcast %82 : vector<16x1xf32> to vector<16x32xf32>
    %91 = arith.subf %74, %90 : vector<16x32xf32>
    %cst_41 = arith.constant 9.99999974E-6 : f32
    %92 = vector.broadcast %cst_41 : f32 to vector<16x1xf32>
    %93 = arith.addf %89, %92 : vector<16x1xf32>
    %94 = math.rsqrt %93 : vector<16x1xf32>
    %95 = vector.broadcast %94 : vector<16x1xf32> to vector<16x32xf32>
    %96 = arith.mulf %91, %95 : vector<16x32xf32>
    %97 = vector.broadcast %76 : vector<1x32xf32> to vector<16x32xf32>
    %98 = arith.mulf %96, %97 : vector<16x32xf32>
    %99 = vector.broadcast %78 : vector<1x32xf32> to vector<16x32xf32>
    %100 = arith.addf %98, %99 : vector<16x32xf32>
    %101 = vector.broadcast %1 : vector<16x1xf32> to vector<16x32xf32>
    %102 = arith.mulf %100, %101 : vector<16x32xf32>
    %c0_42 = arith.constant 0 : index
    %c0_43 = arith.constant 0 : index
    %c0_44 = arith.constant 0 : index
    %103 = vector.load %arg9[%c0_42, %c0_43, %c0_44] : memref<2x32x64xf32, #tpu.memory_space<vmem>>, vector<1x32x64xf32>
    %104 = vector.shape_cast %103 : vector<1x32x64xf32> to vector<32x64xf32>
    %cst_45 = arith.constant dense<0.000000e+00> : vector<16x64xf32>
    %105 = tpu.matmul %102, %104, %cst_45 {dimension_numbers = #tpu.dot_dimension_numbers<[1], [0], [0], [1], [0, 0, 1, 1], [], []>} : vector<16x32xf32>, vector<32x64xf32>, vector<16x64xf32> -> vector<16x64xf32>
    %c0_46 = arith.constant 0 : index
    %c0_47 = arith.constant 0 : index
    %c0_48 = arith.constant 0 : index
    %106 = vector.load %arg10[%c0_46, %c0_47, %c0_48] : memref<2x1x64xf32, #tpu.memory_space<vmem>>, vector<1x1x64xf32>
    %107 = vector.shape_cast %106 : vector<1x1x64xf32> to vector<1x64xf32>
    %108 = vector.broadcast %107 : vector<1x64xf32> to vector<16x64xf32>
    %109 = arith.addf %105, %108 : vector<16x64xf32>
    %cst_49 = arith.constant 0.000000e+00 : f32
    %110 = vector.broadcast %cst_49 : f32 to vector<16x64xf32>
    %111 = arith.maximumf %109, %110 : vector<16x64xf32>
    %c0_50 = arith.constant 0 : index
    %c0_51 = arith.constant 0 : index
    %c0_52 = arith.constant 0 : index
    %112 = vector.load %arg11[%c0_50, %c0_51, %c0_52] : memref<2x64x32xf32, #tpu.memory_space<vmem>>, vector<1x64x32xf32>
    %113 = vector.shape_cast %112 : vector<1x64x32xf32> to vector<64x32xf32>
    %cst_53 = arith.constant dense<0.000000e+00> : vector<16x32xf32>
    %114 = tpu.matmul %111, %113, %cst_53 {dimension_numbers = #tpu.dot_dimension_numbers<[1], [0], [0], [1], [0, 0, 1, 1], [], []>} : vector<16x64xf32>, vector<64x32xf32>, vector<16x32xf32> -> vector<16x32xf32>
    %c0_54 = arith.constant 0 : index
    %c0_55 = arith.constant 0 : index
    %c0_56 = arith.constant 0 : index
    %115 = vector.load %arg12[%c0_54, %c0_55, %c0_56] : memref<2x1x32xf32, #tpu.memory_space<vmem>>, vector<1x1x32xf32>
    %116 = vector.shape_cast %115 : vector<1x1x32xf32> to vector<1x32xf32>
    %117 = vector.broadcast %116 : vector<1x32xf32> to vector<16x32xf32>
    %118 = arith.addf %114, %117 : vector<16x32xf32>
    %119 = arith.addf %102, %118 : vector<16x32xf32>
    %c0_57 = arith.constant 0 : index
    %c0_58 = arith.constant 0 : index
    %c0_59 = arith.constant 0 : index
    %120 = vector.load %arg13[%c0_57, %c0_58, %c0_59] : memref<2x1x32xf32, #tpu.memory_space<vmem>>, vector<1x1x32xf32>
    %121 = vector.shape_cast %120 : vector<1x1x32xf32> to vector<1x32xf32>
    %c0_60 = arith.constant 0 : index
    %c0_61 = arith.constant 0 : index
    %c0_62 = arith.constant 0 : index
    %122 = vector.load %arg14[%c0_60, %c0_61, %c0_62] : memref<2x1x32xf32, #tpu.memory_space<vmem>>, vector<1x1x32xf32>
    %123 = vector.shape_cast %122 : vector<1x1x32xf32> to vector<1x32xf32>
    %cst_63 = arith.constant dense<0.000000e+00> : vector<16xf32>
    %124 = vector.multi_reduction <add>, %119, %cst_63 [1] : vector<16x32xf32> to vector<16xf32>
    %125 = vector.shape_cast %124 : vector<16xf32> to vector<16x1xf32>
    %cst_64 = arith.constant 3.200000e+01 : f32
    %126 = vector.broadcast %cst_64 : f32 to vector<16x1xf32>
    %127 = arith.divf %125, %126 : vector<16x1xf32>
    %128 = vector.broadcast %127 : vector<16x1xf32> to vector<16x32xf32>
    %129 = arith.subf %119, %128 : vector<16x32xf32>
    %130 = arith.mulf %129, %129 : vector<16x32xf32>
    %cst_65 = arith.constant dense<0.000000e+00> : vector<16xf32>
    %131 = vector.multi_reduction <add>, %130, %cst_65 [1] : vector<16x32xf32> to vector<16xf32>
    %132 = vector.shape_cast %131 : vector<16xf32> to vector<16x1xf32>
    %cst_66 = arith.constant 3.200000e+01 : f32
    %133 = vector.broadcast %cst_66 : f32 to vector<16x1xf32>
    %134 = arith.divf %132, %133 : vector<16x1xf32>
    %135 = vector.broadcast %127 : vector<16x1xf32> to vector<16x32xf32>
    %136 = arith.subf %119, %135 : vector<16x32xf32>
    %cst_67 = arith.constant 9.99999974E-6 : f32
    %137 = vector.broadcast %cst_67 : f32 to vector<16x1xf32>
    %138 = arith.addf %134, %137 : vector<16x1xf32>
    %139 = math.rsqrt %138 : vector<16x1xf32>
    %140 = vector.broadcast %139 : vector<16x1xf32> to vector<16x32xf32>
    %141 = arith.mulf %136, %140 : vector<16x32xf32>
    %142 = vector.broadcast %121 : vector<1x32xf32> to vector<16x32xf32>
    %143 = arith.mulf %141, %142 : vector<16x32xf32>
    %144 = vector.broadcast %123 : vector<1x32xf32> to vector<16x32xf32>
    %145 = arith.addf %143, %144 : vector<16x32xf32>
    %146 = vector.broadcast %1 : vector<16x1xf32> to vector<16x32xf32>
    %147 = arith.mulf %145, %146 : vector<16x32xf32>
    %c1 = arith.constant 1 : index
    %c0_68 = arith.constant 0 : index
    %c0_69 = arith.constant 0 : index
    %148 = vector.load %arg3[%c1, %c0_68, %c0_69] : memref<2x32x96xf32, #tpu.memory_space<vmem>>, vector<1x32x96xf32>
    %149 = vector.shape_cast %148 : vector<1x32x96xf32> to vector<32x96xf32>
    %cst_70 = arith.constant dense<0.000000e+00> : vector<16x96xf32>
    %150 = tpu.matmul %147, %149, %cst_70 {dimension_numbers = #tpu.dot_dimension_numbers<[1], [0], [0], [1], [0, 0, 1, 1], [], []>} : vector<16x32xf32>, vector<32x96xf32>, vector<16x96xf32> -> vector<16x96xf32>
    %c1_71 = arith.constant 1 : index
    %c0_72 = arith.constant 0 : index
    %c0_73 = arith.constant 0 : index
    %151 = vector.load %arg4[%c1_71, %c0_72, %c0_73] : memref<2x1x96xf32, #tpu.memory_space<vmem>>, vector<1x1x96xf32>
    %152 = vector.shape_cast %151 : vector<1x1x96xf32> to vector<1x96xf32>
    %153 = vector.broadcast %152 : vector<1x96xf32> to vector<16x96xf32>
    %154 = arith.addf %150, %153 : vector<16x96xf32>
    %155 = vector.extract_strided_slice %154 {offsets = [0, 0], sizes = [16, 8], strides = [1, 1]} : vector<16x96xf32> to vector<16x8xf32>
    %156 = vector.extract_strided_slice %154 {offsets = [0, 8], sizes = [16, 8], strides = [1, 1]} : vector<16x96xf32> to vector<16x8xf32>
    %157 = vector.extract_strided_slice %154 {offsets = [0, 16], sizes = [16, 8], strides = [1, 1]} : vector<16x96xf32> to vector<16x8xf32>
    %158 = vector.extract_strided_slice %154 {offsets = [0, 24], sizes = [16, 8], strides = [1, 1]} : vector<16x96xf32> to vector<16x8xf32>
    %159 = tpu.concatenate %155, %156, %157, %158 in 0 : vector<16x8xf32>, vector<16x8xf32>, vector<16x8xf32>, vector<16x8xf32> -> vector<64x8xf32>
    %160 = vector.shape_cast %159 : vector<64x8xf32> to vector<8x8x8xf32>
    %161 = vector.extract_strided_slice %154 {offsets = [0, 32], sizes = [16, 8], strides = [1, 1]} : vector<16x96xf32> to vector<16x8xf32>
    %162 = vector.extract_strided_slice %154 {offsets = [0, 40], sizes = [16, 8], strides = [1, 1]} : vector<16x96xf32> to vector<16x8xf32>
    %163 = vector.extract_strided_slice %154 {offsets = [0, 48], sizes = [16, 8], strides = [1, 1]} : vector<16x96xf32> to vector<16x8xf32>
    %164 = vector.extract_strided_slice %154 {offsets = [0, 56], sizes = [16, 8], strides = [1, 1]} : vector<16x96xf32> to vector<16x8xf32>
    %165 = tpu.concatenate %161, %162, %163, %164 in 0 : vector<16x8xf32>, vector<16x8xf32>, vector<16x8xf32>, vector<16x8xf32> -> vector<64x8xf32>
    %166 = vector.shape_cast %165 : vector<64x8xf32> to vector<8x8x8xf32>
    %167 = vector.extract_strided_slice %154 {offsets = [0, 64], sizes = [16, 8], strides = [1, 1]} : vector<16x96xf32> to vector<16x8xf32>
    %168 = vector.extract_strided_slice %154 {offsets = [0, 72], sizes = [16, 8], strides = [1, 1]} : vector<16x96xf32> to vector<16x8xf32>
    %169 = vector.extract_strided_slice %154 {offsets = [0, 80], sizes = [16, 8], strides = [1, 1]} : vector<16x96xf32> to vector<16x8xf32>
    %170 = vector.extract_strided_slice %154 {offsets = [0, 88], sizes = [16, 8], strides = [1, 1]} : vector<16x96xf32> to vector<16x8xf32>
    %171 = tpu.concatenate %167, %168, %169, %170 in 0 : vector<16x8xf32>, vector<16x8xf32>, vector<16x8xf32>, vector<16x8xf32> -> vector<64x8xf32>
    %172 = vector.shape_cast %171 : vector<64x8xf32> to vector<8x8x8xf32>
    "tpu.trace_start"() <{level = 10 : i32, message = "hqd,hkd->hqk"}> : () -> ()
    %cst_74 = arith.constant dense<0.000000e+00> : vector<8x8x8xf32>
    %173 = tpu.matmul %160, %166, %cst_74 {dimension_numbers = #tpu.dot_dimension_numbers<[2], [2], [1], [1], [0, 0, 0, 1, 1, 1], [0], [0]>} : vector<8x8x8xf32>, vector<8x8x8xf32>, vector<8x8x8xf32> -> vector<8x8x8xf32>
    "tpu.trace_stop"() : () -> ()
    %174 = arith.addf %173, %2 : vector<8x8x8xf32>
    %cst_75 = arith.constant dense<0xFF800000> : vector<8x8xf32>
    %175 = vector.multi_reduction <maximumf>, %174, %cst_75 [2] : vector<8x8x8xf32> to vector<8x8xf32>
    %176 = vector.shape_cast %175 : vector<8x8xf32> to vector<8x8x1xf32>
    %177 = vector.broadcast %176 : vector<8x8x1xf32> to vector<8x8x8xf32>
    %178 = arith.subf %174, %177 : vector<8x8x8xf32>
    %179 = math.exp %178 : vector<8x8x8xf32>
    %cst_76 = arith.constant dense<0.000000e+00> : vector<8x8xf32>
    %180 = vector.multi_reduction <add>, %179, %cst_76 [2] : vector<8x8x8xf32> to vector<8x8xf32>
    %181 = vector.shape_cast %180 : vector<8x8xf32> to vector<8x8x1xf32>
    %182 = tpu.reciprocal %181 : vector<8x8x1xf32> -> vector<8x8x1xf32>
    %183 = vector.broadcast %182 : vector<8x8x1xf32> to vector<8x8x8xf32>
    %184 = arith.mulf %179, %183 : vector<8x8x8xf32>
    %c1_77 = arith.constant 1 : index
    %c0_78 = arith.constant 0 : index
    %c0_79 = arith.constant 0 : index
    %c0_80 = arith.constant 0 : index
    %185 = vector.load %arg16[%c1_77, %c0_78, %c0_79, %c0_80] : memref<2x8x8x8xf32, #tpu.memory_space<vmem>>, vector<1x8x8x8xf32>
    %186 = vector.shape_cast %185 : vector<1x8x8x8xf32> to vector<8x8x8xf32>
    %187 = vector.shape_cast %184 : vector<8x8x8xf32> to vector<1x8x8x8xf32>
    tpu.vector_store %arg16[%c1_77, %c0_78, %c0_79, %c0_80], %187 {strides = array<i32>} : memref<2x8x8x8xf32, #tpu.memory_space<vmem>>, vector<1x8x8x8xf32>,
    "tpu.trace_start"() <{level = 10 : i32, message = "hqk,hkd->hqd"}> : () -> ()
    %cst_81 = arith.constant dense<0.000000e+00> : vector<8x8x8xf32>
    %188 = tpu.matmul %184, %172, %cst_81 {dimension_numbers = #tpu.dot_dimension_numbers<[2], [1], [1], [2], [0, 0, 0, 1, 1, 2], [0], [0]>} : vector<8x8x8xf32>, vector<8x8x8xf32>, vector<8x8x8xf32> -> vector<8x8x8xf32>
    "tpu.trace_stop"() : () -> ()
    %189 = vector.shape_cast %188 : vector<8x8x8xf32> to vector<4x16x8xf32>
    %c1_82 = arith.constant 1 : index
    %c0_83 = arith.constant 0 : index
    %c0_84 = arith.constant 0 : index
    %c0_85 = arith.constant 0 : index
    %190 = vector.load %arg5[%c1_82, %c0_83, %c0_84, %c0_85] : memref<2x4x8x32xf32, #tpu.memory_space<vmem>>, vector<1x4x8x32xf32>
    %191 = vector.shape_cast %190 : vector<1x4x8x32xf32> to vector<4x8x32xf32>
    %c1_86 = arith.constant 1 : index
    %c0_87 = arith.constant 0 : index
    %c0_88 = arith.constant 0 : index
    %192 = vector.load %arg6[%c1_86, %c0_87, %c0_88] : memref<2x1x32xf32, #tpu.memory_space<vmem>>, vector<1x1x32xf32>
    %193 = vector.shape_cast %192 : vector<1x1x32xf32> to vector<1x32xf32>
    %194 = vector.extract_strided_slice %189 {offsets = [0, 0, 0], sizes = [1, 16, 8], strides = [1, 1, 1]} : vector<4x16x8xf32> to vector<1x16x8xf32>
    %195 = vector.shape_cast %194 : vector<1x16x8xf32> to vector<16x8xf32>
    %196 = vector.extract_strided_slice %191 {offsets = [0, 0, 0], sizes = [1, 8, 32], strides = [1, 1, 1]} : vector<4x8x32xf32> to vector<1x8x32xf32>
    %197 = vector.shape_cast %196 : vector<1x8x32xf32> to vector<8x32xf32>
    %cst_89 = arith.constant dense<0.000000e+00> : vector<16x32xf32>
    %198 = tpu.matmul %195, %197, %cst_89 {dimension_numbers = #tpu.dot_dimension_numbers<[1], [0], [0], [1], [0, 0, 1, 1], [], []>} : vector<16x8xf32>, vector<8x32xf32>, vector<16x32xf32> -> vector<16x32xf32>
    %199 = vector.broadcast %193 : vector<1x32xf32> to vector<16x32xf32>
    %200 = arith.addf %199, %198 : vector<16x32xf32>
    %201 = vector.extract_strided_slice %189 {offsets = [1, 0, 0], sizes = [1, 16, 8], strides = [1, 1, 1]} : vector<4x16x8xf32> to vector<1x16x8xf32>
    %202 = vector.shape_cast %201 : vector<1x16x8xf32> to vector<16x8xf32>
    %203 = vector.extract_strided_slice %191 {offsets = [1, 0, 0], sizes = [1, 8, 32], strides = [1, 1, 1]} : vector<4x8x32xf32> to vector<1x8x32xf32>
    %204 = vector.shape_cast %203 : vector<1x8x32xf32> to vector<8x32xf32>
    %cst_90 = arith.constant dense<0.000000e+00> : vector<16x32xf32>
    %205 = tpu.matmul %202, %204, %cst_90 {dimension_numbers = #tpu.dot_dimension_numbers<[1], [0], [0], [1], [0, 0, 1, 1], [], []>} : vector<16x8xf32>, vector<8x32xf32>, vector<16x32xf32> -> vector<16x32xf32>
    %206 = arith.addf %200, %205 : vector<16x32xf32>
    %207 = vector.extract_strided_slice %189 {offsets = [2, 0, 0], sizes = [1, 16, 8], strides = [1, 1, 1]} : vector<4x16x8xf32> to vector<1x16x8xf32>
    %208 = vector.shape_cast %207 : vector<1x16x8xf32> to vector<16x8xf32>
    %209 = vector.extract_strided_slice %191 {offsets = [2, 0, 0], sizes = [1, 8, 32], strides = [1, 1, 1]} : vector<4x8x32xf32> to vector<1x8x32xf32>
    %210 = vector.shape_cast %209 : vector<1x8x32xf32> to vector<8x32xf32>
    %cst_91 = arith.constant dense<0.000000e+00> : vector<16x32xf32>
    %211 = tpu.matmul %208, %210, %cst_91 {dimension_numbers = #tpu.dot_dimension_numbers<[1], [0], [0], [1], [0, 0, 1, 1], [], []>} : vector<16x8xf32>, vector<8x32xf32>, vector<16x32xf32> -> vector<16x32xf32>
    %212 = arith.addf %206, %211 : vector<16x32xf32>
    %213 = vector.extract_strided_slice %189 {offsets = [3, 0, 0], sizes = [1, 16, 8], strides = [1, 1, 1]} : vector<4x16x8xf32> to vector<1x16x8xf32>
    %214 = vector.shape_cast %213 : vector<1x16x8xf32> to vector<16x8xf32>
    %215 = vector.extract_strided_slice %191 {offsets = [3, 0, 0], sizes = [1, 8, 32], strides = [1, 1, 1]} : vector<4x8x32xf32> to vector<1x8x32xf32>
    %216 = vector.shape_cast %215 : vector<1x8x32xf32> to vector<8x32xf32>
    %cst_92 = arith.constant dense<0.000000e+00> : vector<16x32xf32>
    %217 = tpu.matmul %214, %216, %cst_92 {dimension_numbers = #tpu.dot_dimension_numbers<[1], [0], [0], [1], [0, 0, 1, 1], [], []>} : vector<16x8xf32>, vector<8x32xf32>, vector<16x32xf32> -> vector<16x32xf32>
    %218 = arith.addf %212, %217 : vector<16x32xf32>
    %219 = arith.addf %147, %218 : vector<16x32xf32>
    %c1_93 = arith.constant 1 : index
    %c0_94 = arith.constant 0 : index
    %c0_95 = arith.constant 0 : index
    %220 = vector.load %arg7[%c1_93, %c0_94, %c0_95] : memref<2x1x32xf32, #tpu.memory_space<vmem>>, vector<1x1x32xf32>
    %221 = vector.shape_cast %220 : vector<1x1x32xf32> to vector<1x32xf32>
    %c1_96 = arith.constant 1 : index
    %c0_97 = arith.constant 0 : index
    %c0_98 = arith.constant 0 : index
    %222 = vector.load %arg8[%c1_96, %c0_97, %c0_98] : memref<2x1x32xf32, #tpu.memory_space<vmem>>, vector<1x1x32xf32>
    %223 = vector.shape_cast %222 : vector<1x1x32xf32> to vector<1x32xf32>
    %cst_99 = arith.constant dense<0.000000e+00> : vector<16xf32>
    %224 = vector.multi_reduction <add>, %219, %cst_99 [1] : vector<16x32xf32> to vector<16xf32>
    %225 = vector.shape_cast %224 : vector<16xf32> to vector<16x1xf32>
    %cst_100 = arith.constant 3.200000e+01 : f32
    %226 = vector.broadcast %cst_100 : f32 to vector<16x1xf32>
    %227 = arith.divf %225, %226 : vector<16x1xf32>
    %228 = vector.broadcast %227 : vector<16x1xf32> to vector<16x32xf32>
    %229 = arith.subf %219, %228 : vector<16x32xf32>
    %230 = arith.mulf %229, %229 : vector<16x32xf32>
    %cst_101 = arith.constant dense<0.000000e+00> : vector<16xf32>
    %231 = vector.multi_reduction <add>, %230, %cst_101 [1] : vector<16x32xf32> to vector<16xf32>
    %232 = vector.shape_cast %231 : vector<16xf32> to vector<16x1xf32>
    %cst_102 = arith.constant 3.200000e+01 : f32
    %233 = vector.broadcast %cst_102 : f32 to vector<16x1xf32>
    %234 = arith.divf %232, %233 : vector<16x1xf32>
    %235 = vector.broadcast %227 : vector<16x1xf32> to vector<16x32xf32>
    %236 = arith.subf %219, %235 : vector<16x32xf32>
    %cst_103 = arith.constant 9.99999974E-6 : f32
    %237 = vector.broadcast %cst_103 : f32 to vector<16x1xf32>
    %238 = arith.addf %234, %237 : vector<16x1xf32>
    %239 = math.rsqrt %238 : vector<16x1xf32>
    %240 = vector.broadcast %239 : vector<16x1xf32> to vector<16x32xf32>
    %241 = arith.mulf %236, %240 : vector<16x32xf32>
    %242 = vector.broadcast %221 : vector<1x32xf32> to vector<16x32xf32>
    %243 = arith.mulf %241, %242 : vector<16x32xf32>
    %244 = vector.broadcast %223 : vector<1x32xf32> to vector<16x32xf32>
    %245 = arith.addf %243, %244 : vector<16x32xf32>
    %246 = vector.broadcast %1 : vector<16x1xf32> to vector<16x32xf32>
    %247 = arith.mulf %245, %246 : vector<16x32xf32>
    %c1_104 = arith.constant 1 : index
    %c0_105 = arith.constant 0 : index
    %c0_106 = arith.constant 0 : index
    %248 = vector.load %arg9[%c1_104, %c0_105, %c0_106] : memref<2x32x64xf32, #tpu.memory_space<vmem>>, vector<1x32x64xf32>
    %249 = vector.shape_cast %248 : vector<1x32x64xf32> to vector<32x64xf32>
    %cst_107 = arith.constant dense<0.000000e+00> : vector<16x64xf32>
    %250 = tpu.matmul %247, %249, %cst_107 {dimension_numbers = #tpu.dot_dimension_numbers<[1], [0], [0], [1], [0, 0, 1, 1], [], []>} : vector<16x32xf32>, vector<32x64xf32>, vector<16x64xf32> -> vector<16x64xf32>
    %c1_108 = arith.constant 1 : index
    %c0_109 = arith.constant 0 : index
    %c0_110 = arith.constant 0 : index
    %251 = vector.load %arg10[%c1_108, %c0_109, %c0_110] : memref<2x1x64xf32, #tpu.memory_space<vmem>>, vector<1x1x64xf32>
    %252 = vector.shape_cast %251 : vector<1x1x64xf32> to vector<1x64xf32>
    %253 = vector.broadcast %252 : vector<1x64xf32> to vector<16x64xf32>
    %254 = arith.addf %250, %253 : vector<16x64xf32>
    %cst_111 = arith.constant 0.000000e+00 : f32
    %255 = vector.broadcast %cst_111 : f32 to vector<16x64xf32>
    %256 = arith.maximumf %254, %255 : vector<16x64xf32>
    %c1_112 = arith.constant 1 : index
    %c0_113 = arith.constant 0 : index
    %c0_114 = arith.constant 0 : index
    %257 = vector.load %arg11[%c1_112, %c0_113, %c0_114] : memref<2x64x32xf32, #tpu.memory_space<vmem>>, vector<1x64x32xf32>
    %258 = vector.shape_cast %257 : vector<1x64x32xf32> to vector<64x32xf32>
    %cst_115 = arith.constant dense<0.000000e+00> : vector<16x32xf32>
    %259 = tpu.matmul %256, %258, %cst_115 {dimension_numbers = #tpu.dot_dimension_numbers<[1], [0], [0], [1], [0, 0, 1, 1], [], []>} : vector<16x64xf32>, vector<64x32xf32>, vector<16x32xf32> -> vector<16x32xf32>
    %c1_116 = arith.constant 1 : index
    %c0_117 = arith.constant 0 : index
    %c0_118 = arith.constant 0 : index
    %260 = vector.load %arg12[%c1_116, %c0_117, %c0_118] : memref<2x1x32xf32, #tpu.memory_space<vmem>>, vector<1x1x32xf32>
    %261 = vector.shape_cast %260 : vector<1x1x32xf32> to vector<1x32xf32>
    %262 = vector.broadcast %261 : vector<1x32xf32> to vector<16x32xf32>
    %263 = arith.addf %259, %262 : vector<16x32xf32>
    %264 = arith.addf %247, %263 : vector<16x32xf32>
    %c1_119 = arith.constant 1 : index
    %c0_120 = arith.constant 0 : index
    %c0_121 = arith.constant 0 : index
    %265 = vector.load %arg13[%c1_119, %c0_120, %c0_121] : memref<2x1x32xf32, #tpu.memory_space<vmem>>, vector<1x1x32xf32>
    %266 = vector.shape_cast %265 : vector<1x1x32xf32> to vector<1x32xf32>
    %c1_122 = arith.constant 1 : index
    %c0_123 = arith.constant 0 : index
    %c0_124 = arith.constant 0 : index
    %267 = vector.load %arg14[%c1_122, %c0_123, %c0_124] : memref<2x1x32xf32, #tpu.memory_space<vmem>>, vector<1x1x32xf32>
    %268 = vector.shape_cast %267 : vector<1x1x32xf32> to vector<1x32xf32>
    %cst_125 = arith.constant dense<0.000000e+00> : vector<16xf32>
    %269 = vector.multi_reduction <add>, %264, %cst_125 [1] : vector<16x32xf32> to vector<16xf32>
    %270 = vector.shape_cast %269 : vector<16xf32> to vector<16x1xf32>
    %cst_126 = arith.constant 3.200000e+01 : f32
    %271 = vector.broadcast %cst_126 : f32 to vector<16x1xf32>
    %272 = arith.divf %270, %271 : vector<16x1xf32>
    %273 = vector.broadcast %272 : vector<16x1xf32> to vector<16x32xf32>
    %274 = arith.subf %264, %273 : vector<16x32xf32>
    %275 = arith.mulf %274, %274 : vector<16x32xf32>
    %cst_127 = arith.constant dense<0.000000e+00> : vector<16xf32>
    %276 = vector.multi_reduction <add>, %275, %cst_127 [1] : vector<16x32xf32> to vector<16xf32>
    %277 = vector.shape_cast %276 : vector<16xf32> to vector<16x1xf32>
    %cst_128 = arith.constant 3.200000e+01 : f32
    %278 = vector.broadcast %cst_128 : f32 to vector<16x1xf32>
    %279 = arith.divf %277, %278 : vector<16x1xf32>
    %280 = vector.broadcast %272 : vector<16x1xf32> to vector<16x32xf32>
    %281 = arith.subf %264, %280 : vector<16x32xf32>
    %cst_129 = arith.constant 9.99999974E-6 : f32
    %282 = vector.broadcast %cst_129 : f32 to vector<16x1xf32>
    %283 = arith.addf %279, %282 : vector<16x1xf32>
    %284 = math.rsqrt %283 : vector<16x1xf32>
    %285 = vector.broadcast %284 : vector<16x1xf32> to vector<16x32xf32>
    %286 = arith.mulf %281, %285 : vector<16x32xf32>
    %287 = vector.broadcast %266 : vector<1x32xf32> to vector<16x32xf32>
    %288 = arith.mulf %286, %287 : vector<16x32xf32>
    %289 = vector.broadcast %268 : vector<1x32xf32> to vector<16x32xf32>
    %290 = arith.addf %288, %289 : vector<16x32xf32>
    %291 = vector.broadcast %1 : vector<16x1xf32> to vector<16x32xf32>
    %292 = arith.mulf %290, %291 : vector<16x32xf32>
    %c0_130 = arith.constant 0 : index
    %c0_131 = arith.constant 0 : index
    %293 = vector.load %arg15[%c0_130, %c0_131] : memref<16x32xf32, #tpu.memory_space<vmem>>, vector<16x32xf32>
    tpu.vector_store %arg15[%c0_130, %c0_131], %292 {strides = array<i32>} : memref<16x32xf32, #tpu.memory_space<vmem>>, vector<16x32xf32>,
    return
  }
}

</mosaic_0001>

<bundles_post_ra>
// kernel: encoder_forward.1
= control target key start
LH: loop header
LB: loop body
LE: loop exit
PB: predicated region body
PF: predicated region fallthrough
CT: control target
= control target key end

     0   :  { %s5774_s0 = inlined_call_operand.vmem [shape: f32[16,32], index: 0, kind: input, shape index: {}]   ;;  %s5775_s1 = inlined_call_operand.vmem [shape: f32[8,8,8], index: 1, kind: input, shape index: {}]   ;;  %s5776_s2 = inlined_call_operand.vmem [shape: f32[16,1], index: 2, kind: input, shape index: {}]   ;;  %s5777_s3 = inlined_call_operand.vmem [shape: f32[2,32,96], index: 3, kind: input, shape index: {}]   ;;  %s5778_s4 = inlined_call_operand.vmem [shape: f32[2,1,96], index: 4, kind: input, shape index: {}]   ;;  %s5779_s5 = inlined_call_operand.vmem [shape: f32[2,4,8,32], index: 5, kind: input, shape index: {}]   ;;  %s5780_s6 = inlined_call_operand.vmem [shape: f32[2,1,32], index: 6, kind: input, shape index: {}]   ;;  %s5781_s7 = inlined_call_operand.vmem [shape: f32[2,1,32], index: 7, kind: input, shape index: {}]   ;;  %s5782_s8 = inlined_call_operand.vmem [shape: f32[2,1,32], index: 8, kind: input, shape index: {}]   ;;  %s5783_s9 = inlined_call_operand.vmem [shape: f32[2,32,64], index: 9, kind: input, shape index: {}]   ;;  %s5784_s10 = inlined_call_operand.vmem [shape: f32[2,1,64], index: 10, kind: input, shape index: {}]   ;;  %s5785_s11 = inlined_call_operand.vmem [shape: f32[2,64,32], index: 11, kind: input, shape index: {}]   ;;  %s5786_s12 = inlined_call_operand.vmem [shape: f32[2,1,32], index: 12, kind: input, shape index: {}]   ;;  %s5787_s13 = inlined_call_operand.vmem [shape: f32[2,1,32], index: 13, kind: input, shape index: {}]   ;;  %s5788_s14 = inlined_call_operand.vmem [shape: f32[2,1,32], index: 14, kind: input, shape index: {}]   ;;  %s5789_s15 = inlined_call_operand.hbm [shape: f32[16,32], index: 15, kind: output, shape index: {0}]   ;;  %s5790_s16 = inlined_call_operand.hbm [shape: f32[2,8,8,8], index: 16, kind: output, shape index: {1}]  }
   0x1   :  { %5792 = sst [smem:[#allocation8_spill]] %s5774_s0 }
   0x2   :  { %22 = vsyncpa [#allocation3], 0  ;;  %v66_v0 = vld [vmem:[%s5777_s3] sm:$0xff]  ;;  %v67_v1 = vld [vmem:[%s5777_s3 + $0x8] sm:$0xff]  ;;  %vm77_vm0 = vcmask 261120   ;;  %s5793_s0 = sld [smem:[#allocation8_spill]] }
   0x3   :  { %v68_v2 = vld [vmem:[%s5777_s3 + $0x10] sm:$0xff]  ;;  %v4755_v3 = vpack.c.bf16 %v67_v1, %v66_v0  ;;  %v69_v4 = vld [vmem:[%s5777_s3 + $0x18] sm:$0xff] }
   0x4   :  { %v4759_v6 = vpack.c.bf16 %v69_v4, %v68_v2 }
   0x8   :  { %v5089_v5 = vld [vmem:[%s5793_s0] sm:$0xff] }
   0x9   :  { %4481 = vmatprep.mubr.msk.f32.mxu0 %vm77_vm0, %v5089_v5 }
   0xa   :  { %23 = vsyncpa [#allocation5], 0  ;;  %4756 = vmatprep.subr.bf16.mxu0 %v4755_v3  ;;  %v5096_v7 = vld [vmem:[%s5793_s0 + $0x8] sm:$0xff]  ;;  %v4221_v8 = vld [vmem:[%s5778_s4] ss:$0 sm:$0xff]  ;;  %v4977_v10 = vmov 0.0  }
   0xb   :  { %4758 = vmatpush3.bf16.msra.mxu0 %v4755_v3  ;;  %4489 = vmatprep.subr.mxu1 %v4977_v10  ;;  %s4978_s21 = smov 112   ;;  %s4979_s22 = smov 120   ;;  %vm4980_vm1 = vmmov 0   ;;  %vm175_vm2 = vcmask 64512   ;;  %v5199_v29 = vld [vmem:[%s5775_s1 + $0x8] sm:$0xff]  ;;  %v5204_v30 = vld [vmem:[%s5775_s1] sm:$0xff] }
   0xc   :  { %4760 = vmatprep.subr.bf16.mxu0 %v4759_v6  ;;  %4491 = vmatprep.mubr.msk.f32.mxu1 %vm4980_vm1, %v4977_v10  ;;  %s4981_s23 = smov 104   ;;  %s4982_s24 = smov 96   ;;  %v5213_v41 = vld [vmem:[%s5775_s1 + $0x18] sm:$0xff]  ;;  %v5218_v42 = vld [vmem:[%s5775_s1 + $0x20] sm:$0xff]  ;;  %v5223_v43 = vld [vmem:[%s5775_s1 + $0x10] sm:$0xff]  ;;  %vm1997_vm3 = vcmask 523264  }
   0xd   :  { %s4983_s25 = smov 64   ;;  %v5233_v53 = vld [vmem:[%s5775_s1 + $0x28] sm:$0xff]  ;;  %v5240_v60 = vld [vmem:[%s5775_s1 + $0x38] sm:$0xff]  ;;  %v5252_v4 = vld [vmem:[%s5775_s1 + $0x30] sm:$0xff] }
   0xf   :  { %4762 = vmatpush3.bf16.msra.mxu0 %v4759_v6 }
  0x10   :  { %4484 = vmatprep.subr.mxu0 %v4977_v10 }
  0x12   :  { %4482 = vmatmul.mubr.msk.f32.vlgmr.msra.gmra.mrb[0].mxu0 %vm77_vm0, %v5096_v7 }
  0x13   :  { %4486 = vmatprep.mubr.msk.f32.mxu0 %vm4980_vm1, %v4977_v10 }
  0xe5   :  { %v4483_v9 = vpop.f32.mrb[0].mxu0 }
  0xe6   :  { %v150_v11 = vpop.f32.mrb[1].mxu0  ;;  %v5111_v13 = vadd.f32 %v4483_v9, %v4221_v8 }
  0xe7   :  { %v151_v12 = vadd.f32 %v4221_v8, %v150_v11 }
  0xe9   :  { %165 = vrot.lane.b32.xlu1 %v151_v12, %s4978_s21  ;;  %161 = vrot.lane.b32.xlu0 %v151_v12, %s4979_s22 }
  0xed   :  { %167 = vrot.lane.b32.xlu1 %v5111_v13, %s4978_s21  ;;  %163 = vrot.lane.b32.xlu0 %v5111_v13, %s4979_s22 }
  0xf1   :  { %171 = vrot.lane.b32.xlu1 %v5111_v13, %s4981_s23  ;;  %169 = vrot.lane.b32.xlu0 %v151_v12, %s4981_s23 }
  0xf5   :  { %250 = vrot.lane.b32.xlu1 %v5111_v13, %s4982_s24  ;;  %173 = vrot.lane.b32.xlu0 %v151_v12, %s4982_s24 }
 0x15b   :  { %v5123_v14 = vpop.permute.xlu1 %165  ;;  %v5125_v15 = vpop.permute.xlu0 %161 }
 0x15c   :  { %326 = vrot.lane.b32.xlu0 %v5125_v15, %s4982_s24 }
 0x15f   :  { %v5129_v16 = vpop.permute.xlu1 %167  ;;  %v5131_v17 = vpop.permute.xlu0 %163 }
 0x160   :  { %478 = vrot.lane.b32.xlu0 %v5123_v14, %s4982_s24  ;;  %402 = vrot.lane.b32.xlu1 %v5131_v17, %s4982_s24 }
 0x163   :  { %v5137_v18 = vpop.permute.xlu1 %171  ;;  %v5139_v19 = vpop.permute.xlu0 %169 }
 0x164   :  { %554 = vrot.lane.b32.xlu1 %v5129_v16, %s4982_s24  ;;  %630 = vrot.lane.b32.xlu0 %v5139_v19, %s4982_s24 }
 0x167   :  { %v251_v20 = vpop.permute.xlu1 %250  ;;  %v174_v21 = vpop.permute.xlu0 %173 }
 0x168   :  { %4490 = vmatpush3.xpose.msk.msra.mxu1 %vm175_vm2, %v251_v20  ;;  %706 = vrot.lane.b32.xlu1 %v5137_v18, %s4982_s24 }
 0x169   :  { %4485 = vmatpush3.xpose.msk.msra.mxu0 %vm175_vm2, %v174_v21  ;;  %4499 = vmatprep.subr.mxu1 %v4977_v10 }
 0x16a   :  { %4494 = vmatprep.subr.mxu0 %v4977_v10 }
 0x16b   :  { %4492 = vmatmul.mubr.msk.f32.vlgmr.msra.gmra.mrb[0].mxu1 %vm175_vm2, %v5111_v13 }
 0x16c   :  { %4487 = vmatmul.mubr.msk.f32.vlgmr.msra.gmra.mrb[2].mxu0 %vm175_vm2, %v151_v12  ;;  %878 = vrot.lane.b32.xlu1 %v151_v12, %s4983_s25 }
 0x16d   :  { %4496 = vmatprep.mubr.msk.f32.mxu0 %vm4980_vm1, %v4977_v10  ;;  %4501 = vmatprep.mubr.msk.f32.mxu1 %vm4980_vm1, %v4977_v10 }
 0x1ce   :  { %v327_v22 = vpop.permute.xlu0 %326 }
 0x1cf   :  { %4495 = vmatpush3.xpose.msk.msra.mxu0 %vm175_vm2, %v327_v22 }
 0x1d0   :  { %4504 = vmatprep.subr.mxu0 %v4977_v10 }
 0x1d2   :  { %v403_v23 = vpop.permute.xlu1 %402  ;;  %4497 = vmatmul.mubr.msk.f32.vlgmr.msra.gmra.mrb[4].mxu0 %vm175_vm2, %v5125_v15  ;;  %v479_v24 = vpop.permute.xlu0 %478 }
 0x1d3   :  { %4500 = vmatpush3.xpose.msk.msra.mxu1 %vm175_vm2, %v403_v23  ;;  %4505 = vmatpush3.xpose.msk.msra.mxu0 %vm175_vm2, %v479_v24 }
 0x1d4   :  { %4506 = vmatprep.mubr.msk.f32.mxu0 %vm4980_vm1, %v4977_v10  ;;  %4509 = vmatprep.subr.mxu1 %v4977_v10 }
 0x1d5   :  { %4514 = vmatprep.subr.mxu0 %v4977_v10 }
 0x1d6   :  { %4502 = vmatmul.mubr.msk.f32.vlgmr.msra.gmra.mrb[2].mxu1 %vm175_vm2, %v5131_v17  ;;  %v555_v25 = vpop.permute.xlu1 %554  ;;  %4507 = vmatmul.mubr.msk.f32.vlgmr.msra.gmra.mrb[6].mxu0 %vm175_vm2, %v5123_v14  ;;  %v631_v26 = vpop.permute.xlu0 %630 }
 0x1d7   :  { %4510 = vmatpush3.xpose.msk.msra.mxu1 %vm175_vm2, %v555_v25  ;;  %4515 = vmatpush3.xpose.msk.msra.mxu0 %vm175_vm2, %v631_v26 }
 0x1d8   :  { %4511 = vmatprep.mubr.msk.f32.mxu1 %vm4980_vm1, %v4977_v10  ;;  %4516 = vmatprep.mubr.msk.f32.mxu0 %vm4980_vm1, %v4977_v10 }
 0x1d9   :  { %4519 = vmatprep.subr.mxu1 %v4977_v10  ;;  %4524 = vmatprep.subr.mxu0 %v4977_v10 }
 0x1da   :  { %4512 = vmatmul.mubr.msk.f32.vlgmr.msra.gmra.mrb[4].mxu1 %vm175_vm2, %v5129_v16  ;;  %v707_v27 = vpop.permute.xlu1 %706  ;;  %4517 = vmatmul.mubr.msk.f32.vlgmr.msra.gmra.mrb[8].mxu0 %vm175_vm2, %v5139_v19 }
 0x1db   :  { %4520 = vmatpush3.xpose.msk.msra.mxu1 %vm175_vm2, %v707_v27  ;;  %4521 = vmatprep.mubr.msk.f32.mxu1 %vm4980_vm1, %v4977_v10 }
 0x1dc   :  { %4529 = vmatprep.subr.mxu1 %v4977_v10  ;;  %4526 = vmatprep.mubr.msk.f32.mxu0 %vm4980_vm1, %v4977_v10 }
 0x1de   :  { %4522 = vmatmul.mubr.msk.f32.vlgmr.msra.gmra.mrb[6].mxu1 %vm175_vm2, %v5137_v18  ;;  %v879_v28 = vpop.permute.xlu1 %878 }
 0x1df   :  { %4525 = vmatpush3.msra.mxu0 %v879_v28  ;;  %4531 = vmatprep.mubr.msk.f32.mxu1 %vm4980_vm1, %v4977_v10 }
 0x1e0   :  { %4534 = vmatprep.subr.mxu0 %v4977_v10 }
 0x23e   :  { %v322_v31 = vpop.f32.mrb[0].mxu1 }
 0x23f   :  { %v246_v32 = vpop.f32.mrb[2].mxu0  ;;  %v323_v33 = vadd.f32 %v322_v31, %v5199_v29  ;;  %v4493_v34 = vpop.f32.mrb[1].mxu1 }
 0x240   :  { %v247_v35 = vadd.f32 %v246_v32, %v5204_v30  ;;  %v4488_v36 = vpop.f32.mrb[3].mxu0 }
 0x241   :  { %v785_v37 = vsel %vm175_vm2, %v323_v33, -inf }
 0x242   :  { %786 = vmax.xlane.f32.xlu1 %v785_v37  ;;  %v782_v38 = vsel %vm175_vm2, %v247_v35, -inf }
 0x243   :  { %783 = vmax.xlane.f32.xlu0 %v782_v38 }
 0x2a5   :  { %v398_v39 = vpop.f32.mrb[4].mxu0 }
 0x2a6   :  { %v4498_v40 = vpop.f32.mrb[5].mxu0  ;;  %v399_v50 = vadd.f32 %v398_v39, %v5223_v43 }
 0x2a8   :  { %v788_v59 = vsel %vm175_vm2, %v399_v50, -inf }
 0x2a9   :  { %v474_v44 = vpop.f32.mrb[2].mxu1  ;;  %v550_v45 = vpop.f32.mrb[6].mxu0 }
 0x2aa   :  { %v475_v46 = vadd.f32 %v474_v44, %v5213_v41  ;;  %v551_v47 = vadd.f32 %v550_v45, %v5218_v42  ;;  %v4503_v48 = vpop.f32.mrb[3].mxu1  ;;  %v4508_v49 = vpop.f32.mrb[7].mxu0 }
 0x2ac   :  { %v791_v51 = vsel %vm175_vm2, %v475_v46, -inf  ;;  %v794_v52 = vsel %vm175_vm2, %v551_v47, -inf }
 0x2ad   :  { %v626_v54 = vpop.f32.mrb[4].mxu1  ;;  %792 = vmax.xlane.f32.xlu0 %v791_v51  ;;  %795 = vmax.xlane.f32.xlu1 %v794_v52  ;;  %v702_v55 = vpop.f32.mrb[8].mxu0 }
 0x2ae   :  { %v4513_v56 = vpop.f32.mrb[5].mxu1  ;;  %v4518_v57 = vpop.f32.mrb[9].mxu0  ;;  %v627_v58 = vadd.f32 %v626_v54, %v5233_v53  ;;  %v703_v8 = vadd.f32 %v702_v55, %v5252_v4 }
 0x2b0   :  { %v797_v0 = vsel %vm175_vm2, %v627_v58, -inf  ;;  %v800_v9 = vsel %vm175_vm2, %v703_v8, -inf }
 0x2b1   :  { %v778_v61 = vpop.f32.mrb[6].mxu1  ;;  %789 = vmax.xlane.f32.xlu0 %v788_v59 }
 0x2b2   :  { %v4523_v62 = vpop.f32.mrb[7].mxu1  ;;  %v779_v63 = vadd.f32 %v778_v61, %v5240_v60 }
 0x2b4   :  { %v803_v1 = vsel %vm175_vm2, %v779_v63, -inf }
 0x2b5   :  { %798 = vmax.xlane.f32.xlu0 %v797_v0 }
 0x2b9   :  { %804 = vmax.xlane.f32.xlu0 %v803_v1 }
 0x2be   :  { %1030 = vrot.lane.b32.xlu1 %v5125_v15, %s4983_s25 }
 0x2cf   :  { %954 = vrot.lane.b32.xlu0 %v5111_v13, %s4983_s25  ;;  %v787_v2 = vpop.xlane.xlu1 %786 }
 0x2d0   :  { %v807_v3 = vsub.f32 %v323_v33, %v787_v2  ;;  %v784_v13 = vpop.xlane.xlu0 %783 }
 0x2d1   :  { %v806_v15 = vsub.f32 %v247_v35, %v784_v13 }
 0x2d2   :  { %v816_v6 = vmul.f32 1.442695, %v807_v3 }
 0x2d3   :  { %v814_v20 = vmul.f32 1.442695, %v806_v15 }
 0x2d4   :  { %4849 = vpow2.f32 %v816_v6 }
 0x2d5   :  { %4851 = vpow2.f32 %v814_v20 }
 0x2de   :  { %v4850_v11 = vpop.eup %4849 }
 0x2df   :  { %v833_v12 = vsel %vm175_vm2, %v4850_v11, 0.0  ;;  %v5259_v21 = vpop.eup %4851 }
 0x2e0   :  { %v830_v22 = vsel %vm175_vm2, %v5259_v21, 0.0 }
 0x2e2   :  { %801 = vmax.xlane.f32.xlu1 %v800_v9 }
 0x2ee   :  { %834 = vadd.xlane.f32.xlu0 %v833_v12 }
 0x2f3   :  { %1106 = vrot.lane.b32.xlu1 %v5131_v17, %s4983_s25 }
 0x317   :  { %831 = vadd.xlane.f32.xlu1 %v830_v22 }
 0x328   :  { %1258 = vrot.lane.b32.xlu1 %v5129_v16, %s4983_s25 }
 0x33a   :  { %v796_v23 = vpop.xlane.xlu1 %795  ;;  %v793_v24 = vpop.xlane.xlu0 %792 }
 0x33b   :  { %v809_v25 = vsub.f32 %v475_v46, %v793_v24  ;;  %v810_v26 = vsub.f32 %v551_v47, %v796_v23  ;;  %v1486_v23 = vld [vmem:[%s5779_s5] sm:$0xff] }
 0x33d   :  { %v820_v27 = vmul.f32 1.442695, %v809_v25  ;;  %v822_v31 = vmul.f32 1.442695, %v810_v26 }
 0x33e   :  { %v790_v28 = vpop.xlane.xlu0 %789  ;;  %v1031_v44 = vpop.permute.xlu1 %1030 }
 0x33f   :  { %v808_v17 = vsub.f32 %v399_v50, %v790_v28  ;;  %4853 = vpow2.f32 %v820_v27 }
 0x341   :  { %v818_v32 = vmul.f32 1.442695, %v808_v17 }
 0x342   :  { %v799_v33 = vpop.xlane.xlu0 %798 }
 0x343   :  { %4855 = vpow2.f32 %v818_v32  ;;  %v811_v45 = vsub.f32 %v627_v58, %v799_v33  ;;  %v1487_v33 = vld [vmem:[%s5779_s5 + $0x8] sm:$0xff] }
 0x344   :  { %4857 = vpow2.f32 %v822_v31 }
 0x345   :  { %v824_v46 = vmul.f32 1.442695, %v811_v45  ;;  %v1489_v45 = vld [vmem:[%s5779_s5 + $0x18] sm:$0xff] }
 0x346   :  { %v805_v34 = vpop.xlane.xlu0 %804 }
 0x347   :  { %v813_v47 = vsub.f32 %v779_v63, %v805_v34  ;;  %4859 = vpow2.f32 %v824_v46 }
 0x349   :  { %v4854_v35 = vpop.eup %4853  ;;  %v828_v51 = vmul.f32 1.442695, %v813_v47 }
 0x34a   :  { %v955_v36 = vpop.permute.xlu0 %954  ;;  %v839_v37 = vsel %vm175_vm2, %v4854_v35, 0.0 }
 0x34b   :  { %4530 = vmatpush3.msra.mxu1 %v955_v36  ;;  %840 = vadd.xlane.f32.xlu0 %v839_v37 }
 0x34c   :  { %4539 = vmatprep.subr.mxu1 %v4977_v10 }
 0x34d   :  { %v4856_v16 = vpop.eup %4855 }
 0x34e   :  { %v836_v38 = vsel %vm175_vm2, %v4856_v16, 0.0  ;;  %v5268_v39 = vpop.eup %4857 }
 0x34f   :  { %837 = vadd.xlane.f32.xlu1 %v836_v38  ;;  %v842_v40 = vsel %vm175_vm2, %v5268_v39, 0.0 }
 0x351   :  { %v5274_v54 = vpop.eup %4859 }
 0x352   :  { %v845_v56 = vsel %vm175_vm2, %v5274_v54, 0.0 }
 0x353   :  { %843 = vadd.xlane.f32.xlu1 %v842_v40 }
 0x361   :  { %1182 = vrot.lane.b32.xlu0 %v5123_v14, %s4983_s25 }
 0x36f   :  { %v802_v48 = vpop.xlane.xlu1 %801 }
 0x370   :  { %v812_v49 = vsub.f32 %v703_v8, %v802_v48 }
 0x372   :  { %v826_v50 = vmul.f32 1.442695, %v812_v49 }
 0x373   :  { %v1107_v62 = vpop.permute.xlu1 %1106 }
 0x374   :  { %4861 = vpow2.f32 %v826_v50 }
 0x375   :  { %4863 = vpow2.f32 %v828_v51 }
 0x37b   :  { %v835_v52 = vpop.xlane.xlu0 %834 }
 0x37c   :  { %4865 = vrcp.f32 %v835_v52 }
 0x37e   :  { %v5276_v55 = vpop.eup %4861 }
 0x37f   :  { %v848_v14 = vsel %vm175_vm2, %v5276_v55, 0.0  ;;  %v5282_v57 = vpop.eup %4863 }
 0x380   :  { %849 = vadd.xlane.f32.xlu1 %v848_v14  ;;  %846 = vadd.xlane.f32.xlu0 %v845_v56  ;;  %v851_v58 = vsel %vm175_vm2, %v5282_v57, 0.0 }
 0x384   :  { %852 = vadd.xlane.f32.xlu0 %v851_v58 }
 0x386   :  { %v4866_v59 = vpop.eup %4865 }
 0x387   :  { %v863_v61 = vmul.f32 %v4866_v59, %v4850_v11 }
 0x389   :  { %871 = vst.msk [vmem:[#allocation4 + $0x8] sm:$0xff] %vm175_vm2, %v863_v61  ;;  %4532 = vmatmul.mubr.msk.f32.vlgmr.msra.gmra.mrb[8].mxu1 %vm175_vm2, %v863_v61 }
 0x38a   :  { %4540 = vmatpush3.msra.mxu1 %v1107_v62  ;;  %4541 = vmatprep.mubr.msk.f32.mxu1 %vm4980_vm1, %v4977_v10 }
 0x38b   :  { %4549 = vmatprep.subr.mxu1 %v4977_v10 }
 0x391   :  { %1410 = vrot.lane.b32.xlu1 %v5137_v18, %s4983_s25 }
 0x39a   :  { %1334 = vrot.lane.b32.xlu0 %v5139_v19, %s4983_s25 }
 0x3a4   :  { %v832_v63 = vpop.xlane.xlu1 %831 }
 0x3a5   :  { %4867 = vrcp.f32 %v832_v63 }
 0x3a8   :  { %v1259_v2 = vpop.permute.xlu1 %1258 }
 0x3af   :  { %v4868_v0 = vpop.eup %4867 }
 0x3b0   :  { %v862_v1 = vmul.f32 %v4868_v0, %v5259_v21  ;;  %v4984_v0 = vmov 0  }
 0x3b1   :  { %4848 = vset.pattern.permute.xlu0 %v4984_v0  ;;  %4847 = vset.pattern.permute.xlu1 %v4984_v0 }
 0x3b2   :  { %870 = vst.msk [vmem:[#allocation4] sm:$0xff] %vm175_vm2, %v862_v1  ;;  %4527 = vmatmul.mubr.msk.f32.vlgmr.msra.gmra.mrb[10].mxu0 %vm175_vm2, %v862_v1  ;;  %v56_v1 = vld [vmem:[%s5776_s2] sm:$0xff] }
 0x3b3   :  { %4535 = vmatpush3.msra.mxu0 %v1031_v44  ;;  %4536 = vmatprep.mubr.msk.f32.mxu0 %vm4980_vm1, %v4977_v10 }
 0x3b4   :  { %4544 = vmatprep.subr.mxu0 %v4977_v10 }
 0x3d8   :  { %v841_v18 = vpop.xlane.xlu0 %840 }
 0x3d9   :  { %4869 = vrcp.f32 %v841_v18 }
 0x3dc   :  { %v838_v3 = vpop.xlane.xlu1 %837  ;;  %v1183_v12 = vpop.permute.xlu0 %1182 }
 0x3dd   :  { %4871 = vrcp.f32 %v838_v3 }
 0x3e0   :  { %v844_v19 = vpop.xlane.xlu1 %843 }
 0x3e1   :  { %4873 = vrcp.f32 %v844_v19 }
 0x3e3   :  { %v4870_v6 = vpop.eup %4869 }
 0x3e4   :  { %v865_v8 = vmul.f32 %v4870_v6, %v4854_v35 }
 0x3e6   :  { %873 = vst.msk [vmem:[#allocation4 + $0x18] sm:$0xff] %vm175_vm2, %v865_v8  ;;  %4542 = vmatmul.mubr.msk.f32.vlgmr.msra.gmra.mrb[10].mxu1 %vm175_vm2, %v865_v8 }
 0x3e7   :  { %v4872_v9 = vpop.eup %4871  ;;  %4550 = vmatpush3.msra.mxu1 %v1259_v2  ;;  %4551 = vmatprep.mubr.msk.f32.mxu1 %vm4980_vm1, %v4977_v10 }
 0x3e8   :  { %v864_v11 = vmul.f32 %v4872_v9, %v4856_v16  ;;  %4559 = vmatprep.subr.mxu1 %v4977_v10  ;;  %v1488_v16 = vld [vmem:[%s5779_s5 + $0x10] sm:$0xff] }
 0x3ea   :  { %872 = vst.msk [vmem:[#allocation4 + $0x10] sm:$0xff] %vm175_vm2, %v864_v11  ;;  %4537 = vmatmul.mubr.msk.f32.vlgmr.msra.gmra.mrb[12].mxu0 %vm175_vm2, %v864_v11 }
 0x3eb   :  { %v4874_v13 = vpop.eup %4873  ;;  %4545 = vmatpush3.msra.mxu0 %v1183_v12  ;;  %4546 = vmatprep.mubr.msk.f32.mxu0 %vm4980_vm1, %v4977_v10  ;;  %v1888_v12 = vld [vmem:[%s5783_s9] sm:$0xff] }
 0x3ec   :  { %v866_v15 = vmul.f32 %v4874_v13, %v5268_v39  ;;  %4554 = vmatprep.subr.mxu0 %v4977_v10  ;;  %v1889_v13 = vld [vmem:[%s5783_s9 + $0x8] sm:$0xff] }
 0x3ee   :  { %874 = vst.msk [vmem:[#allocation4 + $0x20] sm:$0xff] %vm175_vm2, %v866_v15  ;;  %4547 = vmatmul.mubr.msk.f32.vlgmr.msra.gmra.mrb[14].mxu0 %vm175_vm2, %v866_v15  ;;  %v57_v15 = vld [vmem:[%s5776_s2 + $0x8] sm:$0xff] }
 0x3ef   :  { %4556 = vmatprep.mubr.msk.f32.mxu0 %vm4980_vm1, %v4977_v10 }
 0x40d   :  { %v850_v20 = vpop.xlane.xlu1 %849  ;;  %v847_v21 = vpop.xlane.xlu0 %846 }
 0x40e   :  { %4875 = vrcp.f32 %v850_v20  ;;  %v4763_v20 = vpack.c.bf16 %v1889_v13, %v1888_v12 }
 0x40f   :  { %4877 = vrcp.f32 %v847_v21  ;;  %v1890_v21 = vld [vmem:[%s5783_s9 + $0x10] sm:$0xff] }
 0x411   :  { %v853_v22 = vpop.xlane.xlu0 %852  ;;  %v1411_v17 = vpop.permute.xlu1 %1410 }
 0x412   :  { %4879 = vrcp.f32 %v853_v22  ;;  %v1891_v22 = vld [vmem:[%s5783_s9 + $0x18] sm:$0xff] }
 0x415   :  { %v1335_v24 = vpop.permute.xlu0 %1334 }
 0x416   :  { %4555 = vmatpush3.msra.mxu0 %v1335_v24  ;;  %v1982_v24 = vld [vmem:[%s5785_s11] sm:$0xff] }
 0x417   :  { %4564 = vmatprep.subr.mxu0 %v1486_v23 }
 0x418   :  { %v4876_v25 = vpop.eup %4875 }
 0x419   :  { %v4878_v26 = vpop.eup %4877  ;;  %v868_v27 = vmul.f32 %v4876_v25, %v5276_v55  ;;  %v4250_v55 = vld [vmem:[%s5780_s6] ss:$0 sm:$0xff]  ;;  %v1983_v25 = vld [vmem:[%s5785_s11 + $0x8] sm:$0xff] }
 0x41a   :  { %v867_v28 = vmul.f32 %v4878_v26, %v5274_v54  ;;  %v4771_v26 = vpack.c.bf16 %v1983_v25, %v1982_v24 }
 0x41b   :  { %876 = vst.msk [vmem:[#allocation4 + $0x30] sm:$0xff] %vm175_vm2, %v868_v27  ;;  %4557 = vmatmul.mubr.msk.f32.vlgmr.msra.gmra.mrb[16].mxu0 %vm175_vm2, %v868_v27 }
 0x41c   :  { %875 = vst.msk [vmem:[#allocation4 + $0x28] sm:$0xff] %vm175_vm2, %v867_v28  ;;  %4552 = vmatmul.mubr.msk.f32.vlgmr.msra.gmra.mrb[12].mxu1 %vm175_vm2, %v867_v28  ;;  %4565 = vmatpush3.msra.mxu0 %v1486_v23  ;;  %v4880_v31 = vpop.eup %4879  ;;  %v4767_v23 = vpack.c.bf16 %v1891_v22, %v1890_v21 }
 0x41d   :  { %4560 = vmatpush3.msra.mxu1 %v1411_v17  ;;  %4561 = vmatprep.mubr.msk.f32.mxu1 %vm4980_vm1, %v4977_v10  ;;  %v869_v32 = vmul.f32 %v4880_v31, %v5282_v57 }
 0x41e   :  { %4569 = vmatprep.subr.mxu0 %v1487_v33  ;;  %4764 = vmatprep.subr.bf16.mxu1 %v4763_v20 }
 0x41f   :  { %877 = vst.msk [vmem:[#allocation4 + $0x38] sm:$0xff] %vm175_vm2, %v869_v32 }
 0x420   :  { %4562 = vmatmul.mubr.msk.f32.vlgmr.msra.gmra.mrb[14].mxu1 %vm175_vm2, %v869_v32 }
 0x421   :  { %4766 = vmatpush3.bf16.msra.mxu1 %v4763_v20 }
 0x422   :  { %4768 = vmatprep.subr.bf16.mxu1 %v4767_v23 }
 0x425   :  { %4770 = vmatpush3.bf16.msra.mxu1 %v4767_v23 }
 0x426   :  { %4772 = vmatprep.subr.bf16.mxu1 %v4771_v26 }
 0x45c   :  { %v1026_v34 = vpop.f32.mrb[8].mxu1 }
 0x45d   :  { %v4533_v35 = vpop.f32.mrb[9].mxu1 }
 0x45e   :  { %v4257_v35 = vld [vmem:[%s5781_s7] ss:$0 sm:$0xff] }
 0x485   :  { %v950_v36 = vpop.f32.mrb[10].mxu0 }
 0x486   :  { %v4528_v37 = vpop.f32.mrb[11].mxu0  ;;  %4566 = vmatprep.mubr.msk.f32.mxu0 %vm175_vm2, %v950_v36 }
 0x487   :  { %4567 = vmatmul.mubr.msk.f32.vlgmr.msra.gmra.mrb[18].mxu0 %vm175_vm2, %v1026_v34 }
 0x488   :  { %4570 = vmatpush3.msra.mxu0 %v1487_v33 }
 0x489   :  { %4574 = vmatprep.subr.mxu0 %v1488_v16 }
 0x4b9   :  { %v1178_v38 = vpop.f32.mrb[10].mxu1 }
 0x4ba   :  { %v4543_v39 = vpop.f32.mrb[11].mxu1 }
 0x4bd   :  { %v1102_v40 = vpop.f32.mrb[12].mxu0 }
 0x4be   :  { %v4538_v44 = vpop.f32.mrb[13].mxu0  ;;  %4571 = vmatprep.mubr.msk.f32.mxu0 %vm175_vm2, %v1102_v40 }
 0x4bf   :  { %4572 = vmatmul.mubr.msk.f32.vlgmr.msra.gmra.mrb[18].mxu0 %vm175_vm2, %v1178_v38  ;;  %v4258_v38 = vld [vmem:[%s5782_s8] ss:$0 sm:$0xff] }
 0x4c0   :  { %4575 = vmatpush3.msra.mxu0 %v1488_v16 }
 0x4c1   :  { %v1254_v46 = vpop.f32.mrb[14].mxu0  ;;  %4579 = vmatprep.subr.mxu0 %v1489_v45 }
 0x4c2   :  { %v4548_v47 = vpop.f32.mrb[15].mxu0  ;;  %4576 = vmatprep.mubr.msk.f32.mxu0 %vm175_vm2, %v1254_v46 }
 0x4ee   :  { %v1406_v48 = vpop.f32.mrb[16].mxu0 }
 0x4ef   :  { %v1330_v49 = vpop.f32.mrb[12].mxu1  ;;  %v4558_v50 = vpop.f32.mrb[17].mxu0 }
 0x4f0   :  { %v4553_v51 = vpop.f32.mrb[13].mxu1  ;;  %4577 = vmatmul.mubr.msk.f32.vlgmr.msra.gmra.mrb[18].mxu0 %vm175_vm2, %v1330_v49  ;;  %v1985_v49 = vld [vmem:[%s5785_s11 + $0x18] sm:$0xff] }
 0x4f1   :  { %4580 = vmatpush3.msra.mxu0 %v1489_v45  ;;  %4581 = vmatprep.mubr.msk.f32.mxu0 %vm175_vm2, %v1406_v48  ;;  %v1984_v48 = vld [vmem:[%s5785_s11 + $0x10] sm:$0xff] }
 0x4f3   :  { %v1482_v52 = vpop.f32.mrb[14].mxu1 }
 0x4f4   :  { %v4563_v54 = vpop.f32.mrb[15].mxu1 }
 0x4f5   :  { %v1986_v54 = vld [vmem:[%s5785_s11 + $0x20] sm:$0xff] }
 0x4f8   :  { %4582 = vmatmul.mubr.msk.f32.vlgmr.msra.gmra.mrb[18].mxu0 %vm175_vm2, %v1482_v52  ;;  %v4775_v52 = vpack.c.bf16 %v1985_v49, %v1984_v48 }
 0x5cb   :  { %v4583_v14 = vpop.f32.mrb[18].mxu0 }
 0x5cc   :  { %v4819_v56 = vadd.f32 %v4583_v14, %v4250_v55  ;;  %v1818_v57 = vpop.f32.mrb[19].mxu0 }
 0x5cd   :  { %v4820_v58 = vadd.f32 %v4250_v55, %v1818_v57  ;;  %v1987_v55 = vld [vmem:[%s5785_s11 + $0x28] sm:$0xff]  ;;  %v1989_v57 = vld [vmem:[%s5785_s11 + $0x38] sm:$0xff] }
 0x5ce   :  { %v1830_v59 = vadd.f32 %v4819_v56, %v5096_v7  ;;  %v4779_v14 = vpack.c.bf16 %v1987_v55, %v1986_v54  ;;  %v1988_v56 = vld [vmem:[%s5785_s11 + $0x30] sm:$0xff] }
 0x5cf   :  { %v1829_v61 = vadd.f32 %v4820_v58, %v5089_v5  ;;  %v4783_v58 = vpack.c.bf16 %v1989_v57, %v1988_v56  ;;  %v4272_v56 = vld [vmem:[%s5778_s4 + $0x1] ss:$0 sm:$0xff] }
 0x5d0   :  { %v1836_v62 = vsel %vm77_vm0, %v1830_v59, 0.0 }
 0x5d1   :  { %1837 = vadd.xlane.f32.xlu1 %v1836_v62  ;;  %v1833_v63 = vsel %vm77_vm0, %v1829_v61, 0.0 }
 0x5d2   :  { %1834 = vadd.xlane.f32.xlu0 %v1833_v63 }
 0x5e2   :  { %1878 = vperm.xlu1 %4847, %v56_v1  }
 0x65e   :  { %v1838_v2 = vpop.xlane.xlu1 %1837 }
 0x65f   :  { %v1841_v18 = vmul.f32 0.03125, %v1838_v2  ;;  %v1835_v3 = vpop.xlane.xlu0 %1834 }
 0x660   :  { %v1840_v7 = vmul.f32 0.03125, %v1835_v3 }
 0x661   :  { %v1843_v19 = vsub.f32 %v1830_v59, %v1841_v18  ;;  %v4259_v59 = vld [vmem:[%s5784_s10] ss:$0 sm:$0xff] }
 0x662   :  { %v1842_v5 = vsub.f32 %v1829_v61, %v1840_v7  ;;  %v5386_v45 = vpop.permute.xlu1 %1878  ;;  %v4262_v18 = vld [vmem:[%s5786_s12] ss:$0 sm:$0xff] }
 0x663   :  { %v1845_v6 = vmul.f32 %v1843_v19, %v1843_v19 }
 0x664   :  { %v1844_v9 = vmul.f32 %v1842_v5, %v1842_v5 }
 0x665   :  { %v1849_v8 = vsel %vm77_vm0, %v1845_v6, 0.0 }
 0x666   :  { %1850 = vadd.xlane.f32.xlu0 %v1849_v8  ;;  %v1846_v11 = vsel %vm77_vm0, %v1844_v9, 0.0 }
 0x66a   :  { %1847 = vadd.xlane.f32.xlu0 %v1846_v11 }
 0x680   :  { %1883 = vperm.xlu0 %4848, %v57_v15  }
 0x6f3   :  { %v1851_v27 = vpop.xlane.xlu0 %1850 }
 0x6f4   :  { %v1853_v28 = vmul.f32 0.03125, %v1851_v27  ;;  %v4267_v27 = vld [vmem:[%s5777_s3 + $0x20] sm:$0xff] }
 0x6f6   :  { %v1855_v17 = vadd.f32 1e-05, %v1853_v28  ;;  %v4268_v28 = vld [vmem:[%s5777_s3 + $0x28] sm:$0xff] }
 0x6f7   :  { %v1848_v31 = vpop.xlane.xlu0 %1847 }
 0x6f8   :  { %4881 = vrsqrt.f32 %v1855_v17  ;;  %v1852_v32 = vmul.f32 0.03125, %v1848_v31  ;;  %v4787_v17 = vpack.c.bf16 %v4268_v28, %v4267_v27  ;;  %v4269_v31 = vld [vmem:[%s5777_s3 + $0x30] sm:$0xff] }
 0x6fa   :  { %v1854_v33 = vadd.f32 1e-05, %v1852_v32  ;;  %v4270_v32 = vld [vmem:[%s5777_s3 + $0x38] sm:$0xff]  ;;  %4788 = vmatprep.subr.bf16.mxu0 %v4787_v17 }
 0x6fb   :  { %4790 = vmatpush3.bf16.msra.mxu0 %v4787_v17 }
 0x6fc   :  { %4883 = vrsqrt.f32 %v1854_v33  ;;  %v4791_v33 = vpack.c.bf16 %v4270_v32, %v4269_v31 }
 0x6fe   :  { %4792 = vmatprep.subr.bf16.mxu0 %v4791_v33 }
 0x6ff   :  { %v5388_v46 = vpop.permute.xlu0 %1883  ;;  %4794 = vmatpush3.bf16.msra.mxu0 %v4791_v33 }
 0x700   :  { %4625 = vmatprep.subr.mxu0 %v4977_v10 }
 0x702   :  { %v4882_v34 = vpop.eup %4881 }
 0x703   :  { %v1859_v36 = vmul.f32 %v4882_v34, %v1843_v19 }
 0x705   :  { %v1867_v16 = vmul.f32 %v4257_v35, %v1859_v36 }
 0x706   :  { %v4884_v37 = vpop.eup %4883 }
 0x707   :  { %v1858_v39 = vmul.f32 %v4884_v37, %v1842_v5  ;;  %v1875_v44 = vadd.f32 %v4258_v38, %v1867_v16 }
 0x709   :  { %v1866_v40 = vmul.f32 %v4257_v35, %v1858_v39  ;;  %v1887_v51 = vmul.f32 %v5388_v46, %v1875_v44 }
 0x70b   :  { %v1874_v47 = vadd.f32 %v4258_v38, %v1866_v40  ;;  %v4265_v40 = vld [vmem:[%s5787_s13] ss:$0 sm:$0xff] }
 0x70d   :  { %v1886_v50 = vmul.f32 %v5386_v45, %v1874_v47  ;;  %v4266_v47 = vld [vmem:[%s5788_s14] ss:$0 sm:$0xff] }
 0x70f   :  { %4592 = vmatprep.mubr.msk.f32.mxu1 %vm77_vm0, %v1886_v50 }
 0x710   :  { %4593 = vmatmul.mubr.msk.f32.vlgmr.msra.gmra.mrb[16].mxu1 %vm77_vm0, %v1887_v51 }
 0x711   :  { %4774 = vmatpush3.bf16.msra.mxu1 %v4771_v26 }
 0x712   :  { %4776 = vmatprep.subr.bf16.mxu1 %v4775_v52 }
 0x715   :  { %4778 = vmatpush3.bf16.msra.mxu1 %v4775_v52 }
 0x716   :  { %4780 = vmatprep.subr.bf16.mxu1 %v4779_v14 }
 0x719   :  { %4782 = vmatpush3.bf16.msra.mxu1 %v4779_v14 }
 0x71a   :  { %4784 = vmatprep.subr.bf16.mxu1 %v4783_v58 }
 0x71d   :  { %4786 = vmatpush3.bf16.msra.mxu1 %v4783_v58 }
 0x71e   :  { %4630 = vmatprep.subr.mxu1 %v4977_v10 }
 0x7e3   :  { %v4594_v61 = vpop.f32.mrb[16].mxu1 }
 0x7e4   :  { %v1977_v62 = vadd.f32 %v4594_v61, %v4259_v59  ;;  %v1971_v63 = vpop.f32.mrb[17].mxu1 }
 0x7e5   :  { %v1972_v0 = vadd.f32 %v4259_v59, %v1971_v63 }
 0x7e6   :  { %v1981_v2 = vmax.f32 %v1977_v62, 0.0 }
 0x7e7   :  { %v1980_v1 = vmax.f32 %v1972_v0, 0.0 }
 0x7e9   :  { %4611 = vmatprep.mubr.msk.f32.mxu1 %vm1997_vm3, %v1980_v1 }
 0x7ea   :  { %4612 = vmatmul.mubr.msk.f32.vlgmr.msra.gmra.mrb[18].mxu1 %vm1997_vm3, %v1981_v2 }
 0x7eb   :  { %4632 = vmatprep.mubr.msk.f32.mxu1 %vm4980_vm1, %v4977_v10 }
 0x8bd   :  { %v4613_v3 = vpop.f32.mrb[18].mxu1 }
 0x8be   :  { %v2076_v7 = vadd.f32 %v4613_v3, %v4262_v18  ;;  %v2070_v19 = vpop.f32.mrb[19].mxu1 }
 0x8bf   :  { %v2071_v5 = vadd.f32 %v4262_v18, %v2070_v19 }
 0x8c0   :  { %v2080_v6 = vadd.f32 %v2076_v7, %v1887_v51 }
 0x8c1   :  { %v2079_v8 = vadd.f32 %v2071_v5, %v1886_v50 }
 0x8c2   :  { %v2086_v9 = vsel %vm77_vm0, %v2080_v6, 0.0 }
 0x8c3   :  { %2087 = vadd.xlane.f32.xlu0 %v2086_v9  ;;  %v2083_v11 = vsel %vm77_vm0, %v2079_v8, 0.0 }
 0x8c4   :  { %2084 = vadd.xlane.f32.xlu1 %v2083_v11 }
 0x950   :  { %v2088_v12 = vpop.xlane.xlu0 %2087 }
 0x951   :  { %v2090_v13 = vmul.f32 0.03125, %v2088_v12  ;;  %v2085_v15 = vpop.xlane.xlu1 %2084 }
 0x952   :  { %v2089_v20 = vmul.f32 0.03125, %v2085_v15 }
 0x953   :  { %v2092_v21 = vsub.f32 %v2080_v6, %v2090_v13 }
 0x954   :  { %v2091_v22 = vsub.f32 %v2079_v8, %v2089_v20 }
 0x955   :  { %v2094_v25 = vmul.f32 %v2092_v21, %v2092_v21 }
 0x956   :  { %v2093_v23 = vmul.f32 %v2091_v22, %v2091_v22 }
 0x957   :  { %v2098_v26 = vsel %vm77_vm0, %v2094_v25, 0.0 }
 0x958   :  { %v2095_v24 = vsel %vm77_vm0, %v2093_v23, 0.0 }
 0x959   :  { %2096 = vadd.xlane.f32.xlu1 %v2095_v24 }
 0x95d   :  { %2099 = vadd.xlane.f32.xlu1 %v2098_v26 }
 0x9e6   :  { %v2097_v34 = vpop.xlane.xlu1 %2096 }
 0x9e7   :  { %v2101_v35 = vmul.f32 0.03125, %v2097_v34 }
 0x9e9   :  { %v2103_v36 = vadd.f32 1e-05, %v2101_v35 }
 0x9ea   :  { %v2100_v37 = vpop.xlane.xlu1 %2099 }
 0x9eb   :  { %4885 = vrsqrt.f32 %v2103_v36  ;;  %v2102_v16 = vmul.f32 0.03125, %v2100_v37 }
 0x9ed   :  { %v2104_v38 = vadd.f32 1e-05, %v2102_v16 }
 0x9ef   :  { %4887 = vrsqrt.f32 %v2104_v38 }
 0x9f5   :  { %v4886_v39 = vpop.eup %4885 }
 0x9f6   :  { %v2107_v44 = vmul.f32 %v4886_v39, %v2091_v22 }
 0x9f8   :  { %v2115_v48 = vmul.f32 %v4265_v40, %v2107_v44 }
 0x9f9   :  { %v4888_v49 = vpop.eup %4887 }
 0x9fa   :  { %v2108_v50 = vmul.f32 %v4888_v49, %v2092_v21  ;;  %v2123_v51 = vadd.f32 %v4266_v47, %v2115_v48 }
 0x9fc   :  { %v2116_v52 = vmul.f32 %v4265_v40, %v2108_v50  ;;  %v5447_v54 = vmul.f32 %v2123_v51, %v5386_v45 }
 0x9fe   :  { %v2124_v55 = vadd.f32 %v4266_v47, %v2116_v52  ;;  %4622 = vmatprep.mubr.msk.f32.mxu0 %vm77_vm0, %v5447_v54 }
 0xa00   :  { %v5452_v14 = vmul.f32 %v2124_v55, %v5388_v46 }
 0xa02   :  { %4623 = vmatmul.mubr.msk.f32.vlgmr.msra.gmra.mrb[20].mxu0 %vm77_vm0, %v5452_v14 }
 0xa03   :  { %4627 = vmatprep.mubr.msk.f32.mxu0 %vm4980_vm1, %v4977_v10 }
 0xad5   :  { %v4624_v57 = vpop.f32.mrb[20].mxu0 }
 0xad6   :  { %v5461_v58 = vadd.f32 %v4624_v57, %v4272_v56  ;;  %v2212_v59 = vpop.f32.mrb[21].mxu0 }
 0xad7   :  { %v2213_v61 = vadd.f32 %v4272_v56, %v2212_v59 }
 0xad8   :  { %2225 = vrot.lane.b32.xlu0 %v5461_v58, %s4979_s22 }
 0xad9   :  { %2223 = vrot.lane.b32.xlu1 %v2213_v61, %s4979_s22 }
 0xadd   :  { %2227 = vrot.lane.b32.xlu1 %v2213_v61, %s4978_s21 }
 0xae1   :  { %2229 = vrot.lane.b32.xlu1 %v5461_v58, %s4978_s21 }
 0xae5   :  { %2231 = vrot.lane.b32.xlu1 %v2213_v61, %s4981_s23 }
 0xae9   :  { %2233 = vrot.lane.b32.xlu1 %v5461_v58, %s4981_s23 }
 0xaed   :  { %2235 = vrot.lane.b32.xlu1 %v2213_v61, %s4982_s24 }
 0xaf1   :  { %2311 = vrot.lane.b32.xlu1 %v5461_v58, %s4982_s24 }
 0xb4a   :  { %v5475_v62 = vpop.permute.xlu0 %2225 }
 0xb4b   :  { %2463 = vrot.lane.b32.xlu1 %v5475_v62, %s4982_s24  ;;  %v5479_v63 = vpop.permute.xlu1 %2223 }
 0xb4c   :  { %2387 = vrot.lane.b32.xlu0 %v5479_v63, %s4982_s24 }
 0xb4f   :  { %v5483_v0 = vpop.permute.xlu1 %2227 }
 0xb50   :  { %2539 = vrot.lane.b32.xlu0 %v5483_v0, %s4982_s24 }
 0xb53   :  { %v5487_v1 = vpop.permute.xlu1 %2229 }
 0xb54   :  { %2615 = vrot.lane.b32.xlu1 %v5487_v1, %s4982_s24 }
 0xb57   :  { %v5491_v2 = vpop.permute.xlu1 %2231 }
 0xb58   :  { %2691 = vrot.lane.b32.xlu0 %v5491_v2, %s4982_s24 }
 0xb5b   :  { %v5495_v18 = vpop.permute.xlu1 %2233 }
 0xb5c   :  { %2767 = vrot.lane.b32.xlu1 %v5495_v18, %s4982_s24 }
 0xb5f   :  { %v2236_v3 = vpop.permute.xlu1 %2235 }
 0xb60   :  { %2940 = vrot.lane.b32.xlu1 %v2213_v61, %s4983_s25  ;;  %4626 = vmatpush3.xpose.msk.msra.mxu0 %vm175_vm2, %v2236_v3 }
 0xb61   :  { %4635 = vmatprep.subr.mxu0 %v4977_v10 }
 0xb63   :  { %4628 = vmatmul.mubr.msk.f32.vlgmr.msra.gmra.mrb[22].mxu0 %vm175_vm2, %v2213_v61  ;;  %v2312_v7 = vpop.permute.xlu1 %2311 }
 0xb64   :  { %4631 = vmatpush3.xpose.msk.msra.mxu1 %vm175_vm2, %v2312_v7  ;;  %4637 = vmatprep.mubr.msk.f32.mxu0 %vm4980_vm1, %v4977_v10 }
 0xb65   :  { %4640 = vmatprep.subr.mxu1 %v4977_v10 }
 0xb67   :  { %4633 = vmatmul.mubr.msk.f32.vlgmr.msra.gmra.mrb[20].mxu1 %vm175_vm2, %v5461_v58 }
 0xb68   :  { %4642 = vmatprep.mubr.msk.f32.mxu1 %vm4980_vm1, %v4977_v10 }
 0xbbd   :  { %v2464_v19 = vpop.permute.xlu1 %2463 }
 0xbbe   :  { %v2388_v5 = vpop.permute.xlu0 %2387  ;;  %4641 = vmatpush3.xpose.msk.msra.mxu1 %vm175_vm2, %v2464_v19 }
 0xbbf   :  { %4636 = vmatpush3.xpose.msk.msra.mxu0 %vm175_vm2, %v2388_v5  ;;  %4650 = vmatprep.subr.mxu1 %v4977_v10 }
 0xbc0   :  { %4645 = vmatprep.subr.mxu0 %v4977_v10 }
 0xbc1   :  { %4643 = vmatmul.mubr.msk.f32.vlgmr.msra.gmra.mrb[22].mxu1 %vm175_vm2, %v5475_v62 }
 0xbc2   :  { %v2540_v6 = vpop.permute.xlu0 %2539  ;;  %4638 = vmatmul.mubr.msk.f32.vlgmr.msra.gmra.mrb[24].mxu0 %vm175_vm2, %v5479_v63  ;;  %4652 = vmatprep.mubr.msk.f32.mxu1 %vm4980_vm1, %v4977_v10 }
 0xbc3   :  { %4646 = vmatpush3.xpose.msk.msra.mxu0 %vm175_vm2, %v2540_v6  ;;  %4647 = vmatprep.mubr.msk.f32.mxu0 %vm4980_vm1, %v4977_v10 }
 0xbc4   :  { %4655 = vmatprep.subr.mxu0 %v4977_v10 }
 0xbc6   :  { %4648 = vmatmul.mubr.msk.f32.vlgmr.msra.gmra.mrb[26].mxu0 %vm175_vm2, %v5483_v0  ;;  %v2616_v8 = vpop.permute.xlu1 %2615 }
 0xbc7   :  { %4651 = vmatpush3.xpose.msk.msra.mxu1 %vm175_vm2, %v2616_v8  ;;  %4657 = vmatprep.mubr.msk.f32.mxu0 %vm4980_vm1, %v4977_v10 }
 0xbc8   :  { %4660 = vmatprep.subr.mxu1 %v4977_v10 }
 0xbca   :  { %v2692_v9 = vpop.permute.xlu0 %2691  ;;  %4653 = vmatmul.mubr.msk.f32.vlgmr.msra.gmra.mrb[24].mxu1 %vm175_vm2, %v5487_v1 }
 0xbcb   :  { %4656 = vmatpush3.xpose.msk.msra.mxu0 %vm175_vm2, %v2692_v9  ;;  %4662 = vmatprep.mubr.msk.f32.mxu1 %vm4980_vm1, %v4977_v10 }
 0xbcc   :  { %4665 = vmatprep.subr.mxu0 %v4977_v10 }
 0xbce   :  { %4658 = vmatmul.mubr.msk.f32.vlgmr.msra.gmra.mrb[28].mxu0 %vm175_vm2, %v5491_v2  ;;  %v2768_v11 = vpop.permute.xlu1 %2767 }
 0xbcf   :  { %4661 = vmatpush3.xpose.msk.msra.mxu1 %vm175_vm2, %v2768_v11  ;;  %4667 = vmatprep.mubr.msk.f32.mxu0 %vm4980_vm1, %v4977_v10 }
 0xbd0   :  { %4670 = vmatprep.subr.mxu1 %v4977_v10 }
 0xbd2   :  { %4663 = vmatmul.mubr.msk.f32.vlgmr.msra.gmra.mrb[26].mxu1 %vm175_vm2, %v5495_v18  ;;  %v2941_v12 = vpop.permute.xlu1 %2940 }
 0xbd3   :  { %4666 = vmatpush3.msra.mxu0 %v2941_v12  ;;  %4672 = vmatprep.mubr.msk.f32.mxu1 %vm4980_vm1, %v4977_v10 }
 0xbd4   :  { %4675 = vmatprep.subr.mxu0 %v4977_v10 }
 0xc36   :  { %v2307_v13 = vpop.f32.mrb[22].mxu0 }
 0xc37   :  { %v2308_v15 = vadd.f32 %v2307_v13, %v5204_v30  ;;  %v4629_v20 = vpop.f32.mrb[23].mxu0 }
 0xc39   :  { %v2843_v21 = vsel %vm175_vm2, %v2308_v15, -inf }
 0xc3a   :  { %2844 = vmax.xlane.f32.xlu0 %v2843_v21  ;;  %v2383_v22 = vpop.f32.mrb[20].mxu1 }
 0xc3b   :  { %v2384_v23 = vadd.f32 %v2383_v22, %v5199_v29  ;;  %v4634_v24 = vpop.f32.mrb[21].mxu1 }
 0xc3d   :  { %v2846_v25 = vsel %vm175_vm2, %v2384_v23, -inf }
 0xc3e   :  { %2847 = vmax.xlane.f32.xlu1 %v2846_v25 }
 0xc94   :  { %v2535_v26 = vpop.f32.mrb[22].mxu1 }
 0xc95   :  { %v2536_v27 = vadd.f32 %v2535_v26, %v5213_v41  ;;  %v2459_v28 = vpop.f32.mrb[24].mxu0  ;;  %v4644_v17 = vpop.f32.mrb[23].mxu1 }
 0xc96   :  { %v4639_v31 = vpop.f32.mrb[25].mxu0  ;;  %v2460_v32 = vadd.f32 %v2459_v28, %v5223_v43 }
 0xc97   :  { %v2852_v30 = vsel %vm175_vm2, %v2536_v27, -inf }
 0xc98   :  { %2853 = vmax.xlane.f32.xlu0 %v2852_v30  ;;  %v2849_v29 = vsel %vm175_vm2, %v2460_v32, -inf }
 0xc99   :  { %v2611_v33 = vpop.f32.mrb[26].mxu0 }
 0xc9a   :  { %v2612_v34 = vadd.f32 %v2611_v33, %v5218_v42  ;;  %v4649_v35 = vpop.f32.mrb[27].mxu0 }
 0xc9c   :  { %2850 = vmax.xlane.f32.xlu0 %v2849_v29  ;;  %v2855_v36 = vsel %vm175_vm2, %v2612_v34, -inf }
 0xc9d   :  { %2856 = vmax.xlane.f32.xlu1 %v2855_v36  ;;  %v2687_v37 = vpop.f32.mrb[24].mxu1 }
 0xc9e   :  { %v2688_v41 = vadd.f32 %v2687_v37, %v5233_v53  ;;  %v4654_v16 = vpop.f32.mrb[25].mxu1 }
 0xca0   :  { %v2858_v38 = vsel %vm175_vm2, %v2688_v41, -inf }
 0xca1   :  { %v2763_v43 = vpop.f32.mrb[28].mxu0  ;;  %2859 = vmax.xlane.f32.xlu0 %v2858_v38 }
 0xca2   :  { %v4659_v39 = vpop.f32.mrb[29].mxu0  ;;  %v2764_v49 = vadd.f32 %v2763_v43, %v5252_v4 }
 0xca4   :  { %v2861_v51 = vsel %vm175_vm2, %v2764_v49, -inf }
 0xca5   :  { %v2839_v40 = vpop.f32.mrb[26].mxu1 }
 0xca6   :  { %v2840_v44 = vadd.f32 %v2839_v40, %v5240_v60  ;;  %v4664_v42 = vpop.f32.mrb[27].mxu1 }
 0xca8   :  { %v2864_v47 = vsel %vm175_vm2, %v2840_v44, -inf }
 0xca9   :  { %2865 = vmax.xlane.f32.xlu0 %v2864_v47 }
 0xcae   :  { %3092 = vrot.lane.b32.xlu1 %v5479_v63, %s4983_s25 }
 0xcbf   :  { %3016 = vrot.lane.b32.xlu0 %v5461_v58, %s4983_s25 }
 0xcc7   :  { %v2845_v55 = vpop.xlane.xlu0 %2844 }
 0xcc8   :  { %v2867_v56 = vsub.f32 %v2308_v15, %v2845_v55 }
 0xcca   :  { %v2875_v57 = vmul.f32 1.442695, %v2867_v56 }
 0xccb   :  { %v2848_v53 = vpop.xlane.xlu1 %2847 }
 0xccc   :  { %v2868_v48 = vsub.f32 %v2384_v23, %v2848_v53 }
 0xcce   :  { %v2877_v50 = vmul.f32 1.442695, %v2868_v48 }
 0xcd0   :  { %4889 = vpow2.f32 %v2877_v50 }
 0xcd1   :  { %4891 = vpow2.f32 %v2875_v57 }
 0xcd2   :  { %2862 = vmax.xlane.f32.xlu1 %v2861_v51 }
 0xcda   :  { %v4890_v60 = vpop.eup %4889 }
 0xcdb   :  { %v2894_v52 = vsel %vm175_vm2, %v4890_v60, 0.0  ;;  %v5571_v58 = vpop.eup %4891 }
 0xcdc   :  { %v2891_v4 = vsel %vm175_vm2, %v5571_v58, 0.0 }
 0xcde   :  { %2895 = vadd.xlane.f32.xlu0 %v2894_v52  ;;  %v4299_v52 = vld [vmem:[%s5779_s5 + $0x20] sm:$0xff] }
 0xce3   :  { %3168 = vrot.lane.b32.xlu1 %v5475_v62, %s4983_s25 }
 0xd07   :  { %2892 = vadd.xlane.f32.xlu1 %v2891_v4 }
 0xd18   :  { %3320 = vrot.lane.b32.xlu1 %v5487_v1, %s4983_s25 }
 0xd25   :  { %v2854_v59 = vpop.xlane.xlu0 %2853 }
 0xd26   :  { %v2870_v61 = vsub.f32 %v2536_v27, %v2854_v59 }
 0xd28   :  { %v2881_v63 = vmul.f32 1.442695, %v2870_v61 }
 0xd29   :  { %v2851_v3 = vpop.xlane.xlu0 %2850 }
 0xd2a   :  { %4893 = vpow2.f32 %v2881_v63  ;;  %v2869_v7 = vsub.f32 %v2460_v32, %v2851_v3  ;;  %v2857_v62 = vpop.xlane.xlu1 %2856  ;;  %v4300_v3 = vld [vmem:[%s5779_s5 + $0x28] sm:$0xff] }
 0xd2b   :  { %v2871_v19 = vsub.f32 %v2612_v34, %v2857_v62 }
 0xd2c   :  { %v2879_v5 = vmul.f32 1.442695, %v2869_v7 }
 0xd2d   :  { %v2883_v6 = vmul.f32 1.442695, %v2871_v19 }
 0xd2e   :  { %4895 = vpow2.f32 %v2879_v5  ;;  %v2860_v8 = vpop.xlane.xlu0 %2859  ;;  %v3093_v25 = vpop.permute.xlu1 %3092  ;;  %v4301_v5 = vld [vmem:[%s5779_s5 + $0x30] sm:$0xff] }
 0xd2f   :  { %4897 = vpow2.f32 %v2883_v6  ;;  %v2872_v22 = vsub.f32 %v2688_v41, %v2860_v8 }
 0xd31   :  { %v2885_v23 = vmul.f32 1.442695, %v2872_v22 }
 0xd33   :  { %4899 = vpow2.f32 %v2885_v23 }
 0xd34   :  { %v5577_v9 = vpop.eup %4893 }
 0xd35   :  { %v2900_v11 = vsel %vm175_vm2, %v5577_v9, 0.0 }
 0xd36   :  { %v2866_v12 = vpop.xlane.xlu0 %2865  ;;  %2901 = vadd.xlane.f32.xlu0 %v2900_v11 }
 0xd37   :  { %v2874_v24 = vsub.f32 %v2840_v44, %v2866_v12  ;;  %v4302_v12 = vld [vmem:[%s5779_s5 + $0x38] sm:$0xff] }
 0xd38   :  { %v5581_v1 = vpop.eup %4895 }
 0xd39   :  { %v2897_v15 = vsel %vm175_vm2, %v5581_v1, 0.0  ;;  %v5585_v20 = vpop.eup %4897  ;;  %v2889_v26 = vmul.f32 1.442695, %v2874_v24 }
 0xd3a   :  { %v3017_v13 = vpop.permute.xlu0 %3016  ;;  %v2903_v21 = vsel %vm175_vm2, %v5585_v20, 0.0 }
 0xd3b   :  { %4671 = vmatpush3.msra.mxu1 %v3017_v13  ;;  %4901 = vpow2.f32 %v2889_v26 }
 0xd3c   :  { %2898 = vadd.xlane.f32.xlu1 %v2897_v15  ;;  %4680 = vmatprep.subr.mxu1 %v4977_v10 }
 0xd3d   :  { %v5592_v31 = vpop.eup %4899 }
 0xd3e   :  { %v2906_v32 = vsel %vm175_vm2, %v5592_v31, 0.0 }
 0xd40   :  { %2904 = vadd.xlane.f32.xlu1 %v2903_v21 }
 0xd45   :  { %v5596_v30 = vpop.eup %4901 }
 0xd46   :  { %v2912_v34 = vsel %vm175_vm2, %v5596_v30, 0.0 }
 0xd4c   :  { %3244 = vrot.lane.b32.xlu0 %v5483_v0, %s4983_s25 }
 0xd5f   :  { %v2863_v27 = vpop.xlane.xlu1 %2862 }
 0xd60   :  { %v2873_v28 = vsub.f32 %v2764_v49, %v2863_v27 }
 0xd62   :  { %v2887_v17 = vmul.f32 1.442695, %v2873_v28 }
 0xd63   :  { %v3169_v37 = vpop.permute.xlu1 %3168 }
 0xd64   :  { %4903 = vpow2.f32 %v2887_v17 }
 0xd6b   :  { %2907 = vadd.xlane.f32.xlu0 %v2906_v32  ;;  %v2896_v0 = vpop.xlane.xlu0 %2895 }
 0xd6c   :  { %4905 = vrcp.f32 %v2896_v0 }
 0xd6e   :  { %v5598_v33 = vpop.eup %4903 }
 0xd6f   :  { %2913 = vadd.xlane.f32.xlu0 %v2912_v34  ;;  %v2909_v35 = vsel %vm175_vm2, %v5598_v33, 0.0 }
 0xd70   :  { %2910 = vadd.xlane.f32.xlu1 %v2909_v35 }
 0xd76   :  { %v4906_v29 = vpop.eup %4905 }
 0xd77   :  { %v2924_v36 = vmul.f32 %v4906_v29, %v4890_v60 }
 0xd79   :  { %2933 = vst.msk [vmem:[#allocation4 + $0x48] sm:$0xff] %vm175_vm2, %v2924_v36  ;;  %4673 = vmatmul.mubr.msk.f32.vlgmr.msra.gmra.mrb[28].mxu1 %vm175_vm2, %v2924_v36 }
 0xd7a   :  { %4681 = vmatpush3.msra.mxu1 %v3169_v37  ;;  %4682 = vmatprep.mubr.msk.f32.mxu1 %vm4980_vm1, %v4977_v10 }
 0xd7b   :  { %4690 = vmatprep.subr.mxu1 %v4977_v10 }
 0xd81   :  { %3472 = vrot.lane.b32.xlu1 %v5495_v18, %s4983_s25 }
 0xd85   :  { %3396 = vrot.lane.b32.xlu0 %v5491_v2, %s4983_s25 }
 0xd94   :  { %v2893_v41 = vpop.xlane.xlu1 %2892 }
 0xd95   :  { %4907 = vrcp.f32 %v2893_v41 }
 0xd98   :  { %v3321_v18 = vpop.permute.xlu1 %3320 }
 0xd9f   :  { %v4908_v16 = vpop.eup %4907 }
 0xda0   :  { %v2923_v38 = vmul.f32 %v4908_v16, %v5571_v58 }
 0xda2   :  { %2932 = vst.msk [vmem:[#allocation4 + $0x40] sm:$0xff] %vm175_vm2, %v2923_v38  ;;  %4668 = vmatmul.mubr.msk.f32.vlgmr.msra.gmra.mrb[30].mxu0 %vm175_vm2, %v2923_v38 }
 0xda3   :  { %4676 = vmatpush3.msra.mxu0 %v3093_v25  ;;  %4677 = vmatprep.mubr.msk.f32.mxu0 %vm4980_vm1, %v4977_v10  ;;  %v4306_v25 = vld [vmem:[%s5780_s6 + $0x1] ss:$0 sm:$0xff] }
 0xda4   :  { %4685 = vmatprep.subr.mxu0 %v4977_v10 }
 0xdc3   :  { %v2902_v43 = vpop.xlane.xlu0 %2901 }
 0xdc4   :  { %4909 = vrcp.f32 %v2902_v43  ;;  %v4318_v43 = vld [vmem:[%s5783_s9 + $0x28] sm:$0xff] }
 0xdc7   :  { %v3245_v53 = vpop.permute.xlu0 %3244 }
 0xdc9   :  { %v2899_v39 = vpop.xlane.xlu1 %2898 }
 0xdca   :  { %4911 = vrcp.f32 %v2899_v39  ;;  %v4319_v39 = vld [vmem:[%s5783_s9 + $0x30] sm:$0xff] }
 0xdcd   :  { %v2905_v2 = vpop.xlane.xlu1 %2904 }
 0xdce   :  { %v4910_v40 = vpop.eup %4909  ;;  %4913 = vrcp.f32 %v2905_v2  ;;  %v4320_v2 = vld [vmem:[%s5783_s9 + $0x38] sm:$0xff] }
 0xdcf   :  { %v2926_v44 = vmul.f32 %v4910_v40, %v5577_v9  ;;  %v4799_v40 = vpack.c.bf16 %v4320_v2, %v4319_v39 }
 0xdd1   :  { %2935 = vst.msk [vmem:[#allocation4 + $0x58] sm:$0xff] %vm175_vm2, %v2926_v44  ;;  %4683 = vmatmul.mubr.msk.f32.vlgmr.msra.gmra.mrb[30].mxu1 %vm175_vm2, %v2926_v44  ;;  %v4325_v44 = vld [vmem:[%s5785_s11 + $0x40] sm:$0xff] }
 0xdd2   :  { %4691 = vmatpush3.msra.mxu1 %v3321_v18  ;;  %4692 = vmatprep.mubr.msk.f32.mxu1 %vm4980_vm1, %v4977_v10 }
 0xdd3   :  { %4700 = vmatprep.subr.mxu1 %v4977_v10 }
 0xdd4   :  { %v4912_v42 = vpop.eup %4911 }
 0xdd5   :  { %v2925_v47 = vmul.f32 %v4912_v42, %v5581_v1  ;;  %v4326_v42 = vld [vmem:[%s5785_s11 + $0x48] sm:$0xff] }
 0xdd7   :  { %2934 = vst.msk [vmem:[#allocation4 + $0x50] sm:$0xff] %vm175_vm2, %v2925_v47  ;;  %4678 = vmatmul.mubr.msk.f32.vlgmr.msra.gmra.mrb[32].mxu0 %vm175_vm2, %v2925_v47  ;;  %v4803_v47 = vpack.c.bf16 %v4326_v42, %v4325_v44 }
 0xdd8   :  { %v4914_v48 = vpop.eup %4913  ;;  %4686 = vmatpush3.msra.mxu0 %v3245_v53  ;;  %4687 = vmatprep.mubr.msk.f32.mxu0 %vm4980_vm1, %v4977_v10 }
 0xdd9   :  { %v2927_v49 = vmul.f32 %v4914_v48, %v5585_v20  ;;  %4695 = vmatprep.subr.mxu0 %v4977_v10 }
 0xddb   :  { %2936 = vst.msk [vmem:[#allocation4 + $0x60] sm:$0xff] %vm175_vm2, %v2927_v49  ;;  %4688 = vmatmul.mubr.msk.f32.vlgmr.msra.gmra.mrb[34].mxu0 %vm175_vm2, %v2927_v49 }
 0xddc   :  { %4697 = vmatprep.mubr.msk.f32.mxu0 %vm4980_vm1, %v4977_v10 }
 0xdf8   :  { %v2908_v50 = vpop.xlane.xlu0 %2907 }
 0xdf9   :  { %4915 = vrcp.f32 %v2908_v50 }
 0xdfc   :  { %v2914_v51 = vpop.xlane.xlu0 %2913 }
 0xdfd   :  { %4917 = vrcp.f32 %v2914_v51  ;;  %v2911_v60 = vpop.xlane.xlu1 %2910 }
 0xdfe   :  { %4919 = vrcp.f32 %v2911_v60 }
 0xe00   :  { %v3397_v55 = vpop.permute.xlu0 %3396 }
 0xe01   :  { %4696 = vmatpush3.msra.mxu0 %v3397_v55  ;;  %v3473_v58 = vpop.permute.xlu1 %3472  ;;  %v4315_v55 = vld [vmem:[%s5781_s7 + $0x1] ss:$0 sm:$0xff] }
 0xe02   :  { %4705 = vmatprep.subr.mxu0 %v4299_v52 }
 0xe03   :  { %v4916_v56 = vpop.eup %4915 }
 0xe04   :  { %v2928_v57 = vmul.f32 %v4916_v56, %v5592_v31 }
 0xe06   :  { %2937 = vst.msk [vmem:[#allocation4 + $0x68] sm:$0xff] %vm175_vm2, %v2928_v57  ;;  %4693 = vmatmul.mubr.msk.f32.vlgmr.msra.gmra.mrb[32].mxu1 %vm175_vm2, %v2928_v57  ;;  %v4316_v57 = vld [vmem:[%s5782_s8 + $0x1] ss:$0 sm:$0xff] }
 0xe07   :  { %v4918_v4 = vpop.eup %4917  ;;  %4701 = vmatpush3.msra.mxu1 %v3473_v58  ;;  %4702 = vmatprep.mubr.msk.f32.mxu1 %vm4980_vm1, %v4977_v10 }
 0xe08   :  { %v4920_v59 = vpop.eup %4919  ;;  %v2930_v61 = vmul.f32 %v4918_v4, %v5596_v30 }
 0xe09   :  { %v2929_v63 = vmul.f32 %v4920_v59, %v5598_v33 }
 0xe0a   :  { %2939 = vst.msk [vmem:[#allocation4 + $0x78] sm:$0xff] %vm175_vm2, %v2930_v61  ;;  %4703 = vmatmul.mubr.msk.f32.vlgmr.msra.gmra.mrb[34].mxu1 %vm175_vm2, %v2930_v61 }
 0xe0b   :  { %2938 = vst.msk [vmem:[#allocation4 + $0x70] sm:$0xff] %vm175_vm2, %v2929_v63  ;;  %4698 = vmatmul.mubr.msk.f32.vlgmr.msra.gmra.mrb[36].mxu0 %vm175_vm2, %v2929_v63 }
 0xe0c   :  { %4706 = vmatpush3.msra.mxu0 %v4299_v52 }
 0xe0d   :  { %4710 = vmatprep.subr.mxu0 %v4300_v3 }
 0xe4c   :  { %v3088_v10 = vpop.f32.mrb[28].mxu1 }
 0xe4d   :  { %v4674_v7 = vpop.f32.mrb[29].mxu1 }
 0xe4e   :  { %v4328_v7 = vld [vmem:[%s5785_s11 + $0x58] sm:$0xff] }
 0xe75   :  { %v3012_v62 = vpop.f32.mrb[30].mxu0 }
 0xe76   :  { %v4669_v19 = vpop.f32.mrb[31].mxu0  ;;  %4707 = vmatprep.mubr.msk.f32.mxu0 %vm175_vm2, %v3012_v62 }
 0xe77   :  { %4708 = vmatmul.mubr.msk.f32.vlgmr.msra.gmra.mrb[38].mxu0 %vm175_vm2, %v3088_v10  ;;  %v4327_v10 = vld [vmem:[%s5785_s11 + $0x50] sm:$0xff] }
 0xe78   :  { %4711 = vmatpush3.msra.mxu0 %v4300_v3 }
 0xe79   :  { %4715 = vmatprep.subr.mxu0 %v4301_v5 }
 0xea4   :  { %v3240_v6 = vpop.f32.mrb[30].mxu1 }
 0xea5   :  { %v4684_v8 = vpop.f32.mrb[31].mxu1 }
 0xea6   :  { %v4330_v8 = vld [vmem:[%s5785_s11 + $0x68] sm:$0xff] }
 0xeaa   :  { %v3164_v9 = vpop.f32.mrb[32].mxu0 }
 0xeab   :  { %v4679_v11 = vpop.f32.mrb[33].mxu0  ;;  %4712 = vmatprep.mubr.msk.f32.mxu0 %vm175_vm2, %v3164_v9 }
 0xeac   :  { %4713 = vmatmul.mubr.msk.f32.vlgmr.msra.gmra.mrb[38].mxu0 %vm175_vm2, %v3240_v6  ;;  %v4329_v6 = vld [vmem:[%s5785_s11 + $0x60] sm:$0xff]  ;;  %v4331_v11 = vld [vmem:[%s5785_s11 + $0x70] sm:$0xff] }
 0xead   :  { %4716 = vmatpush3.msra.mxu0 %v4301_v5  ;;  %v4807_v5 = vpack.c.bf16 %v4328_v7, %v4327_v10  ;;  %v4811_v9 = vpack.c.bf16 %v4330_v8, %v4329_v6 }
 0xeae   :  { %v3316_v1 = vpop.f32.mrb[34].mxu0  ;;  %4720 = vmatprep.subr.mxu0 %v4302_v12 }
 0xeaf   :  { %v4689_v13 = vpop.f32.mrb[35].mxu0  ;;  %4717 = vmatprep.mubr.msk.f32.mxu0 %vm175_vm2, %v3316_v1 }
 0xeb0   :  { %v4322_v13 = vld [vmem:[%s5784_s10 + $0x1] ss:$0 sm:$0xff]  ;;  %s4985_s10 = smov [#allocation4]  }
 0xed9   :  { %v3392_v15 = vpop.f32.mrb[32].mxu1 }
 0xeda   :  { %v4694_v20 = vpop.f32.mrb[33].mxu1  ;;  %4718 = vmatmul.mubr.msk.f32.vlgmr.msra.gmra.mrb[38].mxu0 %vm175_vm2, %v3392_v15 }
 0xedb   :  { %4721 = vmatpush3.msra.mxu0 %v4302_v12  ;;  %v4332_v12 = vld [vmem:[%s5785_s11 + $0x78] sm:$0xff]  ;;  %s4206_s11 = sshll.u32 %s4985_s10, 4  ;;  %s4207_s11 = int_to_ptr.vmem [resolvable:$true] %s4206_s11 }
 0xedc   :  { %v4815_v1 = vpack.c.bf16 %v4332_v12, %v4331_v11  ;;  %p4934_p1 = scmp.lt.s32.totalorder %s4207_s11, %s4207_s11 }
 0xedd   :  { %v3544_v21 = vpop.f32.mrb[34].mxu1 }
 0xede   :  { %v3468_v22 = vpop.f32.mrb[36].mxu0  ;;  %v4704_v23 = vpop.f32.mrb[35].mxu1 }
 0xedf   :  { %v4699_v24 = vpop.f32.mrb[37].mxu0  ;;  %4722 = vmatprep.mubr.msk.f32.mxu0 %vm175_vm2, %v3468_v22 }
 0xee2   :  { %4723 = vmatmul.mubr.msk.f32.vlgmr.msra.gmra.mrb[38].mxu0 %vm175_vm2, %v3544_v21 }
 0xfb5   :  { %v4724_v26 = vpop.f32.mrb[38].mxu0 }
 0xfb6   :  { %v4821_v27 = vadd.f32 %v4724_v26, %v4306_v25  ;;  %v3882_v28 = vpop.f32.mrb[39].mxu0 }
 0xfb7   :  { %v4822_v17 = vadd.f32 %v4306_v25, %v3882_v28  ;;  %v4334_v25 = vld [vmem:[%s5786_s12 + $0x1] ss:$0 sm:$0xff]  ;;  %s4929_s12 = scalar_lea.vmem %s4207_s11, 2048 }
 0xfb8   :  { %v3894_v31 = vadd.f32 %v4821_v27, %v5452_v14  ;;  %p4930_p0 = scmp.ne.s32.totalorder %s4207_s11, %s4929_s12  ;;  %p4935_p2 = scmp.lt.s32.totalorder %s4929_s12, %s4929_s12 }
 0xfb9   :  { %v3893_v32 = vadd.f32 %v4822_v17, %v5447_v54  ;;  %v4317_v54 = vld [vmem:[%s5783_s9 + $0x20] sm:$0xff] }
 0xfba   :  { %v3902_v30 = vsel %vm77_vm0, %v3894_v31, 0.0  ;;  %v4795_v18 = vpack.c.bf16 %v4318_v43, %v4317_v54  ;;  %p4936_p3 = por %p4935_p2, %p4934_p1 }
 0xfbb   :  { %3903 = vadd.xlane.f32.xlu1 %v3902_v30  ;;  %v3899_v0 = vsel %vm77_vm0, %v3893_v32, 0.0 }
 0xfbc   :  { %3900 = vadd.xlane.f32.xlu0 %v3899_v0  ;;  %4796 = vmatprep.subr.bf16.mxu1 %v4795_v18  ;;  %p4937_p4 = pnand %p4936_p3, %p4930_p0 }
 0xfbd   :  { %4798 = vmatpush3.bf16.msra.mxu1 %v4795_v18 }
 0xfbe   :  { %4800 = vmatprep.subr.bf16.mxu1 %v4799_v40 }
 0xfc1   :  { %4802 = vmatpush3.bf16.msra.mxu1 %v4799_v40 }
 0xfc2   :  { %4804 = vmatprep.subr.bf16.mxu1 %v4803_v47 }
0x1048   :  { %v3904_v33 = vpop.xlane.xlu1 %3903 }
0x1049   :  { %v3906_v34 = vmul.f32 0.03125, %v3904_v33  ;;  %v3901_v35 = vpop.xlane.xlu0 %3900 }
0x104a   :  { %v3905_v29 = vmul.f32 0.03125, %v3901_v35 }
0x104b   :  { %v3908_v36 = vsub.f32 %v3894_v31, %v3906_v34 }
0x104c   :  { %v3907_v37 = vsub.f32 %v3893_v32, %v3905_v29 }
0x104d   :  { %v3910_v38 = vmul.f32 %v3908_v36, %v3908_v36 }
0x104e   :  { %v3909_v41 = vmul.f32 %v3907_v37, %v3907_v37 }
0x104f   :  { %v3914_v14 = vsel %vm77_vm0, %v3910_v38, 0.0 }
0x1050   :  { %v3911_v16 = vsel %vm77_vm0, %v3909_v41, 0.0 }
0x1051   :  { %3912 = vadd.xlane.f32.xlu0 %v3911_v16 }
0x1055   :  { %3915 = vadd.xlane.f32.xlu0 %v3914_v14 }
0x10de   :  { %v3913_v53 = vpop.xlane.xlu0 %3912 }
0x10df   :  { %v3917_v48 = vmul.f32 0.03125, %v3913_v53 }
0x10e1   :  { %v3919_v49 = vadd.f32 1e-05, %v3917_v48 }
0x10e2   :  { %v3916_v50 = vpop.xlane.xlu0 %3915 }
0x10e3   :  { %4921 = vrsqrt.f32 %v3919_v49  ;;  %v3918_v51 = vmul.f32 0.03125, %v3916_v50 }
0x10e5   :  { %v3920_v60 = vadd.f32 1e-05, %v3918_v51 }
0x10e7   :  { %4923 = vrsqrt.f32 %v3920_v60 }
0x10ed   :  { %v4922_v52 = vpop.eup %4921 }
0x10ee   :  { %v3923_v56 = vmul.f32 %v4922_v52, %v3907_v37 }
0x10f0   :  { %v3931_v58 = vmul.f32 %v4315_v55, %v3923_v56 }
0x10f1   :  { %v4924_v4 = vpop.eup %4923 }
0x10f2   :  { %v3924_v59 = vmul.f32 %v4924_v4, %v3908_v36  ;;  %v3939_v61 = vadd.f32 %v4316_v57, %v3931_v58 }
0x10f4   :  { %v3932_v63 = vmul.f32 %v4315_v55, %v3924_v59  ;;  %v3941_v3 = vmul.f32 %v3939_v61, %v5386_v45 }
0x10f6   :  { %v3940_v62 = vadd.f32 %v4316_v57, %v3932_v63  ;;  %4733 = vmatprep.mubr.msk.f32.mxu1 %vm77_vm0, %v3941_v3 }
0x10f8   :  { %v3942_v19 = vmul.f32 %v3940_v62, %v5388_v46 }
0x10fa   :  { %4734 = vmatmul.mubr.msk.f32.vlgmr.msra.gmra.mrb[36].mxu1 %vm77_vm0, %v3942_v19 }
0x10fb   :  { %4806 = vmatpush3.bf16.msra.mxu1 %v4803_v47 }
0x10fc   :  { %4808 = vmatprep.subr.bf16.mxu1 %v4807_v5 }
0x10ff   :  { %4810 = vmatpush3.bf16.msra.mxu1 %v4807_v5 }
0x1100   :  { %4812 = vmatprep.subr.bf16.mxu1 %v4811_v9 }
0x1103   :  { %4814 = vmatpush3.bf16.msra.mxu1 %v4811_v9 }
0x1104   :  { %4816 = vmatprep.subr.bf16.mxu1 %v4815_v1 }
0x1107   :  { %4818 = vmatpush3.bf16.msra.mxu1 %v4815_v1 }
0x11cd   :  { %v4735_v15 = vpop.f32.mrb[36].mxu1 }
0x11ce   :  { %v4034_v20 = vadd.f32 %v4735_v15, %v4322_v13  ;;  %v4028_v21 = vpop.f32.mrb[37].mxu1 }
0x11cf   :  { %v4029_v22 = vadd.f32 %v4322_v13, %v4028_v21 }
0x11d0   :  { %v4038_v24 = vmax.f32 %v4034_v20, 0.0 }
0x11d1   :  { %v4037_v23 = vmax.f32 %v4029_v22, 0.0 }
0x11d3   :  { %4752 = vmatprep.mubr.msk.f32.mxu1 %vm1997_vm3, %v4037_v23 }
0x11d4   :  { %4753 = vmatmul.mubr.msk.f32.vlgmr.msra.gmra.mrb[38].mxu1 %vm1997_vm3, %v4038_v24 }
0x12a7   :  { %v4754_v26 = vpop.f32.mrb[38].mxu1 }
0x12a8   :  { %v4134_v27 = vadd.f32 %v4754_v26, %v4334_v25  ;;  %v4128_v28 = vpop.f32.mrb[39].mxu1 }
0x12a9   :  { %v4129_v17 = vadd.f32 %v4334_v25, %v4128_v28 }
0x12aa   :  { %v4138_v31 = vadd.f32 %v4134_v27, %v3942_v19 }
0x12ab   :  { %v4137_v32 = vadd.f32 %v4129_v17, %v3941_v3 }
0x12ac   :  { %v4146_v30 = vsel %vm77_vm0, %v4138_v31, 0.0 }
0x12ad   :  { %4147 = vadd.xlane.f32.xlu0 %v4146_v30  ;;  %v4143_v0 = vsel %vm77_vm0, %v4137_v32, 0.0 }
0x12ae   :  { %4144 = vadd.xlane.f32.xlu1 %v4143_v0 }
0x133a   :  { %v4148_v33 = vpop.xlane.xlu0 %4147 }
0x133b   :  { %v4150_v34 = vmul.f32 0.03125, %v4148_v33  ;;  %v4145_v35 = vpop.xlane.xlu1 %4144 }
0x133c   :  { %v4149_v29 = vmul.f32 0.03125, %v4145_v35 }
0x133d   :  { %v4152_v36 = vsub.f32 %v4138_v31, %v4150_v34 }
0x133e   :  { %v4151_v37 = vsub.f32 %v4137_v32, %v4149_v29 }
0x133f   :  { %v4154_v41 = vmul.f32 %v4152_v36, %v4152_v36 }
0x1340   :  { %v4153_v16 = vmul.f32 %v4151_v37, %v4151_v37 }
0x1341   :  { %v4158_v38 = vsel %vm77_vm0, %v4154_v41, 0.0 }
0x1342   :  { %4159 = vadd.xlane.f32.xlu0 %v4158_v38  ;;  %v4155_v14 = vsel %vm77_vm0, %v4153_v16, 0.0 }
0x1343   :  { %4156 = vadd.xlane.f32.xlu1 %v4155_v14 }
0x1344   :  { %4940 = shalt.err (!%p4937_p4)
}
0x1345   :  { %s4941_s1 = scalar_lea.hbm %s5790_s16, 2048 }
0x1346   :  { %p4942_p5 = scmp.ne.s32.totalorder %s5790_s16, %s4941_s1  ;;  %p4945_p6 = scmp.lt.u32.totalorder %s4941_s1, %s5790_s16 }
0x1348   :  { %p4947_p7 = pnand %p4945_p6, %p4942_p5 }
0x134a   :  { %4950 = shalt.err (!%p4947_p7)
}
0x134b   :  { %s4986_s23 = smov 128   ;;  %s4987_s24 = smov 8   ;;  %v4339_v42 = vld [vmem:[%s5787_s13 + $0x1] ss:$0 sm:$0xff] }
0x134c   :  { %4212 = dma.vmem_to_hbm [thread:$0]  %s4207_s11, 2048, %s5790_s16, [#allocation5], %s4986_s23, %s4986_s23, %s4987_s24  }
0x134d   :  { %v4340_v49 = vld [vmem:[%s5788_s14 + $0x1] ss:$0 sm:$0xff]  ;;  %s4988_s16 = smov [#allocation2]  }
0x134e   :  { %s4194_s18 = sshll.u32 %s4988_s16, 4  ;;  %s4195_s18 = int_to_ptr.vmem [resolvable:$true] %s4194_s18 }
0x134f   :  { %s4951_s13 = scalar_lea.vmem %s4195_s18, 256  ;;  %p4956_p9 = scmp.lt.s32.totalorder %s4195_s18, %s4195_s18 }
0x1350   :  { %p4952_p8 = scmp.ne.s32.totalorder %s4195_s18, %s4951_s13  ;;  %p4957_p10 = scmp.lt.s32.totalorder %s4951_s13, %s4951_s13 }
0x1352   :  { %p4958_p11 = por %p4957_p10, %p4956_p9 }
0x1354   :  { %p4959_p12 = pnand %p4958_p11, %p4952_p8 }
0x13cf   :  { %v4160_v54 = vpop.xlane.xlu0 %4159 }
0x13d0   :  { %v4162_v43 = vmul.f32 0.03125, %v4160_v54  ;;  %v4157_v18 = vpop.xlane.xlu1 %4156 }
0x13d1   :  { %v4161_v39 = vmul.f32 0.03125, %v4157_v18 }
0x13d2   :  { %v4164_v2 = vadd.f32 1e-05, %v4162_v43 }
0x13d3   :  { %v4163_v40 = vadd.f32 1e-05, %v4161_v39 }
0x13d4   :  { %4925 = vrsqrt.f32 %v4164_v2 }
0x13d5   :  { %4927 = vrsqrt.f32 %v4163_v40 }
0x13de   :  { %v4926_v44 = vpop.eup %4925 }
0x13df   :  { %v4928_v47 = vpop.eup %4927  ;;  %v4168_v53 = vmul.f32 %v4926_v44, %v4152_v36 }
0x13e0   :  { %v4167_v48 = vmul.f32 %v4928_v47, %v4151_v37 }
0x13e1   :  { %v4176_v50 = vmul.f32 %v4339_v42, %v4168_v53 }
0x13e2   :  { %v4175_v51 = vmul.f32 %v4339_v42, %v4167_v48 }
0x13e3   :  { %v4184_v60 = vadd.f32 %v4340_v49, %v4176_v50 }
0x13e4   :  { %v4183_v52 = vadd.f32 %v4340_v49, %v4175_v51 }
0x13e5   :  { %v4186_v55 = vmul.f32 %v4184_v60, %v5388_v46 }
0x13e6   :  { %v4185_v56 = vmul.f32 %v4183_v52, %v5386_v45 }
0x13e7   :  { %4188 = vst.msk [vmem:[#allocation2 + $0x8] sm:$0xff] %vm77_vm0, %v4186_v55 }
0x13e8   :  { %4187 = vst.msk [vmem:[#allocation2] sm:$0xff] %vm77_vm0, %v4185_v56 }
0x13e9   :  { %4962 = shalt.err (!%p4959_p12)
}
0x13ea   :  { %s4963_s19 = scalar_lea.hbm %s5789_s15, 256 }
0x13eb   :  { %p4964_p13 = scmp.ne.s32.totalorder %s5789_s15, %s4963_s19  ;;  %p4967_p0 = scmp.lt.u32.totalorder %s4963_s19, %s5789_s15 }
0x13ed   :  { %p4969_p1 = pnand %p4967_p0, %p4964_p13 }
0x13ef   :  { %4972 = shalt.err (!%p4969_p1)
}
0x13f0   :  { %4200 = dma.vmem_to_hbm [thread:$0]  %s4195_s18, 256, %s5789_s15, [#allocation3], %s4986_s23, %s4986_s23, %s4987_s24  }
0x13f1   :  { %4973 = dma.done.wait [#allocation3], 256  }
0x13f2   :  { %4974 = vsyncadd [#allocation3], 4294967040 }
0x13f3   :  { %4975 = dma.done.wait [#allocation5], 2048  }
0x13f4   :  { %4976 = vsyncadd [#allocation5], 4294965248 }
0x13f5   :  { %4219 = vsyncpa [#allocation3], 1 }
0x13f6   :  { %4220 = vsyncpa [#allocation5], 1 }

</bundles_post_ra>
